<compile_context>
chip_gen: v7x
topology: tpu7x:2x2x1
jax: 0.10.0
libtpu: 0.0.40
codegen_flags: <defaults>
</compile_context>

<pallas_src>
import functools

import jax
import jax.numpy as jnp
from jax.experimental import pallas as pl
from jax.experimental.pallas import tpu as pltpu


# Packed / padded layer widths (all lane-dense multiples of 128).
_IN_RAW = 607        # raw input features
_IN_FUSED = 640      # fused-path input width (607 padded)
_IN_SPLIT = 896      # split-path input width: 4 x 128-aligned branch slabs
_H1 = 640            # 256 + 128 + 128 + 32 = 544, padded to 640
_H2 = 384            # 128 + 64 + 64 + 32 = 288, padded to 384
_H3 = 128            # combine_net hidden
_OUT = 128           # 6 real Q-values, zero-padded to 128 for dense stores
_NUM_ACTIONS = 6


def _round_up(n, m):
    return ((n + m - 1) // m) * m


# --------------------------------------------------------------------------
# Kernels
# --------------------------------------------------------------------------
def _mlp_tail(h1, w2_ref, b2_ref, w3_ref, b3_ref, w4_ref, b4_ref, o_ref):
    """Layers 2..4 (shared by both layer-1 variants). h1: f32 (tb, _H1) pre-ReLU."""
    h1 = jnp.maximum(h1, 0.0)
    h2 = jnp.dot(h1.astype(jnp.bfloat16), w2_ref[...],
                 preferred_element_type=jnp.float32) + b2_ref[...]
    h2 = jnp.maximum(h2, 0.0)
    h3 = jnp.dot(h2.astype(jnp.bfloat16), w3_ref[...],
                 preferred_element_type=jnp.float32) + b3_ref[...]
    h3 = jnp.maximum(h3, 0.0)
    q = jnp.dot(h3.astype(jnp.bfloat16), w4_ref[...],
                preferred_element_type=jnp.float32) + b4_ref[...]
    o_ref[...] = q.astype(o_ref.dtype)   # bf16 lane-dense store


def _fused_kernel(x_ref, w1_ref, b1_ref, w2_ref, b2_ref,
                  w3_ref, b3_ref, w4_ref, b4_ref, o_ref):
    # x is already bf16 (cast upstream); one block-diagonal matmul for all
    # four branch first layers.
    h1 = jnp.dot(x_ref[...], w1_ref[...],
                 preferred_element_type=jnp.float32) + b1_ref[...]
    _mlp_tail(h1, w2_ref, b2_ref, w3_ref, b3_ref, w4_ref, b4_ref, o_ref)


def _split_kernel(x_ref, w1b_ref, w1c_ref, w1l_ref, w1n_ref, b1_ref,
                  w2_ref, b2_ref, w3_ref, b3_ref, w4_ref, b4_ref, o_ref):
    # v5e (MXU-bound) path: x is packed as four 128-aligned branch slabs, so
    # every slice below is whole-vreg (no lane shuffles) and the four small
    # matmuls avoid ~2.5x of zero-block FLOPs vs the fused 640x640 matmul.
    x = x_ref[...]
    h1 = jnp.concatenate([
        jnp.dot(x[:, 0:256],   w1b_ref[...], preferred_element_type=jnp.float32),
        jnp.dot(x[:, 256:512], w1c_ref[...], preferred_element_type=jnp.float32),
        jnp.dot(x[:, 512:768], w1l_ref[...], preferred_element_type=jnp.float32),
        jnp.dot(x[:, 768:896], w1n_ref[...], preferred_element_type=jnp.float32),
    ], axis=1) + b1_ref[...]
    _mlp_tail(h1, w2_ref, b2_ref, w3_ref, b3_ref, w4_ref, b4_ref, o_ref)


# --------------------------------------------------------------------------
# Parameter packing
# --------------------------------------------------------------------------
def pack_params(params):
    """Prepack per-branch weights into lane-dense bf16 matrices (both variants)."""
    f32, bf16 = jnp.float32, jnp.bfloat16

    # Layer 1 (fused): blockdiag(wb1, wc1, wl1, wn1), 640 -> 640.
    w1 = jnp.zeros((_IN_FUSED, _H1), f32)
    w1 = w1.at[0:200, 0:256].set(params["wb1"])
    w1 = w1.at[200:400, 256:384].set(params["wc1"])
    w1 = w1.at[400:600, 384:512].set(params["wl1"])
    w1 = w1.at[600:607, 512:544].set(params["wn1"])

    # Layer 1 (split): per-branch weights padded to 128-aligned slabs.
    w1b = jnp.zeros((256, 256), f32).at[0:200, :].set(params["wb1"])
    w1c = jnp.zeros((256, 128), f32).at[0:200, :].set(params["wc1"])
    w1l = jnp.zeros((256, 128), f32).at[0:200, :].set(params["wl1"])
    w1n = jnp.zeros((128, 128), f32).at[0:7, 0:32].set(params["wn1"])

    b1 = jnp.zeros((1, _H1), f32)
    b1 = b1.at[:, 0:256].set(params["bb1"])
    b1 = b1.at[:, 256:384].set(params["bc1"])
    b1 = b1.at[:, 384:512].set(params["bl1"])
    b1 = b1.at[:, 512:544].set(params["bn1"])

    # Layer 2: blockdiag(wb2, wc2, wl2, I_32) — output layout matches
    # torch.cat([board, current, landing, next], dim=1); ReLU is idempotent on
    # the already-ReLU'd next features, so the identity pass-through is exact.
    w2 = jnp.zeros((_H1, _H2), f32)
    w2 = w2.at[0:256, 0:128].set(params["wb2"])
    w2 = w2.at[256:384, 128:192].set(params["wc2"])
    w2 = w2.at[384:512, 192:256].set(params["wl2"])
    w2 = w2.at[512:544, 256:288].set(jnp.eye(32, dtype=f32))
    b2 = jnp.zeros((1, _H2), f32)
    b2 = b2.at[:, 0:128].set(params["bb2"])
    b2 = b2.at[:, 128:192].set(params["bc2"])
    b2 = b2.at[:, 192:256].set(params["bl2"])

    # Layer 3: combine_net.0 (288 -> 128), rows padded to 384.
    w3 = jnp.zeros((_H2, _H3), f32).at[0:288, :].set(params["wm1"])
    b3 = jnp.asarray(params["bm1"], f32)

    # Layer 4: combine_net.2 (128 -> 6), output columns padded to 128.
    w4 = jnp.zeros((_H3, _OUT), f32).at[:, 0:_NUM_ACTIONS].set(params["wm2"])
    b4 = jnp.zeros((1, _OUT), f32).at[:, 0:_NUM_ACTIONS].set(params["bm2"])

    return {
        "w1": w1.astype(bf16),
        "w1b": w1b.astype(bf16), "w1c": w1c.astype(bf16),
        "w1l": w1l.astype(bf16), "w1n": w1n.astype(bf16),
        "b1": b1,
        "w2": w2.astype(bf16), "b2": b2,
        "w3": w3.astype(bf16), "b3": b3,
        "w4": w4.astype(bf16), "b4": b4,
    }


# --------------------------------------------------------------------------
# Forward wrapper
# --------------------------------------------------------------------------
@functools.lru_cache(maxsize=1)
def _default_split_l1():
    """Use the per-branch L1 variant on MXU-bound v5e, fused block-diag elsewhere."""
    try:
        kind = jax.devices()[0].device_kind.lower()
    except Exception:
        return False
    return ("v5 lite" in kind) or ("v5e" in kind) or ("v5litepod" in kind)


@functools.partial(jax.jit, static_argnames=("tile_b", "split_l1"))
def _forward_jit(x, packed, *, tile_b, split_l1):
    b = x.shape[0]
    assert x.shape[1] == _IN_RAW, x.shape

    # bf16 input feed (halves input HBM bytes; ideally stored bf16 upstream).
    xb = x.astype(jnp.bfloat16)
    if split_l1:
        zeros = lambda n: jnp.zeros((b, n), jnp.bfloat16)
        xp = jnp.concatenate(
            [xb[:, 0:200], zeros(56),       # board   -> [0, 256)
             xb[:, 200:400], zeros(56),     # current -> [256, 512)
             xb[:, 400:600], zeros(56),     # landing -> [512, 768)
             xb[:, 600:607], zeros(121)],   # next    -> [768, 896)
            axis=1)
        in_w = _IN_SPLIT
        ordered = [packed["w1b"], packed["w1c"], packed["w1l"], packed["w1n"],
                   packed["b1"], packed["w2"], packed["b2"],
                   packed["w3"], packed["b3"], packed["w4"], packed["b4"]]
        kernel = _split_kernel
        l1_macs = 256 * 256 + 2 * 256 * 128 + 128 * 128
    else:
        xp = jnp.pad(xb, ((0, 0), (0, _IN_FUSED - _IN_RAW)))
        in_w = _IN_FUSED
        ordered = [packed["w1"], packed["b1"], packed["w2"], packed["b2"],
                   packed["w3"], packed["b3"], packed["w4"], packed["b4"]]
        kernel = _fused_kernel
        l1_macs = _IN_FUSED * _H1

    # Adaptive batch tiling: aim for ~8 grid steps (keeps both v7x TCs busy and
    # pipelines the x DMA) before capping the tile at tile_b.  Tiles are
    # multiples of 16 rows (bf16 sublane packing).  v6e large-batch runs can
    # pass tile_b=1024; keep <=1024 on v7x (64 MiB VMEM per TC).
    b16 = _round_up(max(b, 1), 16)
    tb = max(16, _round_up(pl.cdiv(b16, 8), 16))
    tb = min(tb, int(tile_b))
    bp = _round_up(b16, tb)
    if bp != b:
        xp = jnp.pad(xp, ((0, bp - b), (0, 0)))
    grid = (bp // tb,)

    def const_spec(p):
        # Full-array block, constant index_map: weights stay VMEM-resident
        # across the batch grid (fetched once).
        nd = p.ndim
        return pl.BlockSpec(p.shape, lambda i, _nd=nd: (0,) * _nd)

    in_specs = [pl.BlockSpec((tb, in_w), lambda i: (i, 0))]
    in_specs += [const_spec(p) for p in ordered]
    out_spec = pl.BlockSpec((tb, _OUT), lambda i: (i, 0))

    weight_bytes = sum(int(p.size) * p.dtype.itemsize for p in ordered)
    macs_per_row = l1_macs + _H1 * _H2 + _H2 * _H3 + _H3 * _OUT
    cost = pl.CostEstimate(
        flops=2 * bp * macs_per_row,
        transcendentals=0,
        bytes_accessed=bp * (in_w + _OUT) * 2 + weight_bytes,
    )

    out = pl.pallas_call(
        kernel,
        out_shape=jax.ShapeDtypeStruct((bp, _OUT), jnp.bfloat16),
        grid=grid,
        in_specs=in_specs,
        out_specs=out_spec,
        compiler_params=pltpu.CompilerParams(
            dimension_semantics=("parallel",),
            vmem_limit_bytes=32 * 1024 * 1024,
        ),
        cost_estimate=cost,
    )(xp, *ordered)

    # Tiny (b, 6) slice + f32 cast for API parity with the torch module.
    return out[:b, :_NUM_ACTIONS].astype(jnp.float32)


def medium_dqn_forward(x, packed, tile_b=512, split_l1=None):
    """x: (B, 607) float32. packed: output of pack_params. Returns (B, 6) f32."""
    if split_l1 is None:
        split_l1 = _default_split_l1()
    return _forward_jit(x, packed, tile_b=int(tile_b), split_l1=bool(split_l1))


def medium_dqn_apply(x, packed, valid_actions=None, **kwargs):
    q_values = medium_dqn_forward(x, packed, **kwargs)
    if valid_actions is not None:
        # index_select glue stays in plain JAX (matches torch semantics).
        valid_actions = jnp.asarray(valid_actions, dtype=jnp.int32)
        q_values = jnp.take(q_values, valid_actions, axis=1)
    return q_values


# --------------------------------------------------------------------------
# Init + pure-JAX reference (for the built-in sanity check)
# --------------------------------------------------------------------------
def init_params(key):
    """Deterministic parameter init. Weights stored as (in, out)."""
    dims = {
        "b1": (200, 256), "b2": (256, 128),
        "c1": (200, 128), "c2": (128, 64),
        "l1": (200, 128), "l2": (128, 64),
        "n1": (7, 32),
        "m1": (288, 128), "m2": (128, 6),
    }
    params = {}
    keys = jax.random.split(key, len(dims))
    for k, (name, (fan_in, fan_out)) in zip(keys, dims.items()):
        kw, kb = jax.random.split(k)
        bound = 1.0 / jnp.sqrt(float(fan_in))
        params["w" + name] = jax.random.uniform(
            kw, (fan_in, fan_out), jnp.float32, -bound, bound)
        params["b" + name] = jax.random.uniform(
            kb, (1, fan_out), jnp.float32, -bound, bound)
    return params


def _reference_forward(x, p):
    """Pure-JAX f32 reference of the original PyTorch math."""
    lin = lambda h, w, b: h @ w + b
    relu = lambda h: jnp.maximum(h, 0.0)
    bf = relu(lin(relu(lin(x[:, :200], p["wb1"], p["bb1"])), p["wb2"], p["bb2"]))
    cf = relu(lin(relu(lin(x[:, 200:400], p["wc1"], p["bc1"])), p["wc2"], p["bc2"]))
    lf = relu(lin(relu(lin(x[:, 400:600], p["wl1"], p["bl1"])), p["wl2"], p["bl2"]))
    nf = relu(lin(x[:, 600:], p["wn1"], p["bn1"]))
    comb = jnp.concatenate([bf, cf, lf, nf], axis=1)
    return lin(relu(lin(comb, p["wm1"], p["bm1"])), p["wm2"], p["bm2"])


if __name__ == "__main__":
    key = jax.random.PRNGKey(0)
    k_params, k_x = jax.random.split(key)

    params = init_params(k_params)
    packed = pack_params(params)

    batch = 2
    x = jax.random.normal(k_x, (batch, _IN_RAW), dtype=jnp.float32)
    ref = jax.block_until_ready(_reference_forward(x, params))

    # Check BOTH layer-1 variants against the f32 reference (bf16 matmuls and
    # bf16 output store -> loose tolerance).
    for split in (False, True):
        q = jax.block_until_ready(medium_dqn_forward(x, packed, split_l1=split))
        assert q.shape == (batch, _NUM_ACTIONS), q.shape
        assert jnp.allclose(q, ref, atol=1e-1, rtol=1e-1), (split, q, ref)

    # Auto (device-dependent) mode + valid_actions path.
    q_auto = jax.block_until_ready(medium_dqn_apply(x, packed))
    assert q_auto.shape == (batch, _NUM_ACTIONS)
    q_sel = jax.block_until_ready(medium_dqn_apply(x, packed, valid_actions=[0, 3, 5]))
    assert q_sel.shape == (batch, 3)

    print("KERNEL_OK")
</pallas_src>

<mosaic_0001>
module attributes {stable_mosaic.version = 11 : i64} {
  func.func @_fused_kernel(%arg0: i32, %arg1: memref<16x640xbf16, #tpu.memory_space<vmem>>, %arg2: memref<640x640xbf16, #tpu.memory_space<vmem>>, %arg3: memref<1x640xf32, #tpu.memory_space<vmem>>, %arg4: memref<640x384xbf16, #tpu.memory_space<vmem>>, %arg5: memref<1x384xf32, #tpu.memory_space<vmem>>, %arg6: memref<384x128xbf16, #tpu.memory_space<vmem>>, %arg7: memref<1x128xf32, #tpu.memory_space<vmem>>, %arg8: memref<128x128xbf16, #tpu.memory_space<vmem>>, %arg9: memref<1x128xf32, #tpu.memory_space<vmem>>, %arg10: memref<16x128xbf16, #tpu.memory_space<vmem>>) attributes {dimension_semantics = [#tpu.dimension_semantics<parallel>], iteration_bounds = array<i64: 1>, scalar_prefetch = 0 : i64, scratch_operands = 0 : i64, tpu.core_type = #tpu.core_type<tc>, window_params = [{transform_indices = @transform_0, window_bounds = array<i64: 16, 640>}, {pipeline_mode = #tpu.pipeline_mode<synchronous>, transform_indices = @transform_1, window_bounds = array<i64: 640, 640>}, {pipeline_mode = #tpu.pipeline_mode<synchronous>, transform_indices = @transform_2, window_bounds = array<i64: 1, 640>}, {pipeline_mode = #tpu.pipeline_mode<synchronous>, transform_indices = @transform_3, window_bounds = array<i64: 640, 384>}, {pipeline_mode = #tpu.pipeline_mode<synchronous>, transform_indices = @transform_4, window_bounds = array<i64: 1, 384>}, {pipeline_mode = #tpu.pipeline_mode<synchronous>, transform_indices = @transform_5, window_bounds = array<i64: 384, 128>}, {pipeline_mode = #tpu.pipeline_mode<synchronous>, transform_indices = @transform_6, window_bounds = array<i64: 1, 128>}, {pipeline_mode = #tpu.pipeline_mode<synchronous>, transform_indices = @transform_7, window_bounds = array<i64: 128, 128>}, {pipeline_mode = #tpu.pipeline_mode<synchronous>, transform_indices = @transform_8, window_bounds = array<i64: 1, 128>}, {transform_indices = @transform_9, window_bounds = array<i64: 16, 128>}]} {
    %c0 = arith.constant 0 : index
    %c0_0 = arith.constant 0 : index
    %0 = vector.load %arg1[%c0, %c0_0] : memref<16x640xbf16, #tpu.memory_space<vmem>>, vector<16x640xbf16>
    %c0_1 = arith.constant 0 : index
    %c0_2 = arith.constant 0 : index
    %1 = vector.load %arg2[%c0_1, %c0_2] : memref<640x640xbf16, #tpu.memory_space<vmem>>, vector<640x640xbf16>
    %cst = arith.constant dense<0.000000e+00> : vector<16x640xf32>
    %2 = tpu.matmul %0, %1, %cst {dimension_numbers = #tpu.dot_dimension_numbers<[1], [0], [0], [1], [0, 0, 1, 1], [], []>} : vector<16x640xbf16>, vector<640x640xbf16>, vector<16x640xf32> -> vector<16x640xf32>
    %c0_3 = arith.constant 0 : index
    %c0_4 = arith.constant 0 : index
    %3 = vector.load %arg3[%c0_3, %c0_4] : memref<1x640xf32, #tpu.memory_space<vmem>>, vector<1x640xf32>
    %4 = vector.broadcast %3 : vector<1x640xf32> to vector<16x640xf32>
    %5 = arith.addf %2, %4 : vector<16x640xf32>
    %cst_5 = arith.constant 0.000000e+00 : f32
    %6 = vector.broadcast %cst_5 : f32 to vector<16x640xf32>
    %7 = arith.maximumf %5, %6 : vector<16x640xf32>
    %8 = arith.truncf %7 : vector<16x640xf32> to vector<16x640xbf16>
    %c0_6 = arith.constant 0 : index
    %c0_7 = arith.constant 0 : index
    %9 = vector.load %arg4[%c0_6, %c0_7] : memref<640x384xbf16, #tpu.memory_space<vmem>>, vector<640x384xbf16>
    %cst_8 = arith.constant dense<0.000000e+00> : vector<16x384xf32>
    %10 = tpu.matmul %8, %9, %cst_8 {dimension_numbers = #tpu.dot_dimension_numbers<[1], [0], [0], [1], [0, 0, 1, 1], [], []>} : vector<16x640xbf16>, vector<640x384xbf16>, vector<16x384xf32> -> vector<16x384xf32>
    %c0_9 = arith.constant 0 : index
    %c0_10 = arith.constant 0 : index
    %11 = vector.load %arg5[%c0_9, %c0_10] : memref<1x384xf32, #tpu.memory_space<vmem>>, vector<1x384xf32>
    %12 = vector.broadcast %11 : vector<1x384xf32> to vector<16x384xf32>
    %13 = arith.addf %10, %12 : vector<16x384xf32>
    %cst_11 = arith.constant 0.000000e+00 : f32
    %14 = vector.broadcast %cst_11 : f32 to vector<16x384xf32>
    %15 = arith.maximumf %13, %14 : vector<16x384xf32>
    %16 = arith.truncf %15 : vector<16x384xf32> to vector<16x384xbf16>
    %c0_12 = arith.constant 0 : index
    %c0_13 = arith.constant 0 : index
    %17 = vector.load %arg6[%c0_12, %c0_13] : memref<384x128xbf16, #tpu.memory_space<vmem>>, vector<384x128xbf16>
    %cst_14 = arith.constant dense<0.000000e+00> : vector<16x128xf32>
    %18 = tpu.matmul %16, %17, %cst_14 {dimension_numbers = #tpu.dot_dimension_numbers<[1], [0], [0], [1], [0, 0, 1, 1], [], []>} : vector<16x384xbf16>, vector<384x128xbf16>, vector<16x128xf32> -> vector<16x128xf32>
    %c0_15 = arith.constant 0 : index
    %c0_16 = arith.constant 0 : index
    %19 = vector.load %arg7[%c0_15, %c0_16] : memref<1x128xf32, #tpu.memory_space<vmem>>, vector<1x128xf32>
    %20 = vector.broadcast %19 : vector<1x128xf32> to vector<16x128xf32>
    %21 = arith.addf %18, %20 : vector<16x128xf32>
    %cst_17 = arith.constant 0.000000e+00 : f32
    %22 = vector.broadcast %cst_17 : f32 to vector<16x128xf32>
    %23 = arith.maximumf %21, %22 : vector<16x128xf32>
    %24 = arith.truncf %23 : vector<16x128xf32> to vector<16x128xbf16>
    %c0_18 = arith.constant 0 : index
    %c0_19 = arith.constant 0 : index
    %25 = vector.load %arg8[%c0_18, %c0_19] : memref<128x128xbf16, #tpu.memory_space<vmem>>, vector<128x128xbf16>
    %cst_20 = arith.constant dense<0.000000e+00> : vector<16x128xf32>
    %26 = tpu.matmul %24, %25, %cst_20 {dimension_numbers = #tpu.dot_dimension_numbers<[1], [0], [0], [1], [0, 0, 1, 1], [], []>} : vector<16x128xbf16>, vector<128x128xbf16>, vector<16x128xf32> -> vector<16x128xf32>
    %c0_21 = arith.constant 0 : index
    %c0_22 = arith.constant 0 : index
    %27 = vector.load %arg9[%c0_21, %c0_22] : memref<1x128xf32, #tpu.memory_space<vmem>>, vector<1x128xf32>
    %28 = vector.broadcast %27 : vector<1x128xf32> to vector<16x128xf32>
    %29 = arith.addf %26, %28 : vector<16x128xf32>
    %30 = arith.truncf %29 : vector<16x128xf32> to vector<16x128xbf16>
    %c0_23 = arith.constant 0 : index
    %c0_24 = arith.constant 0 : index
    %31 = vector.load %arg10[%c0_23, %c0_24] : memref<16x128xbf16, #tpu.memory_space<vmem>>, vector<16x128xbf16>
    tpu.vector_store %arg10[%c0_23, %c0_24], %30 {strides = array<i32>} : memref<16x128xbf16, #tpu.memory_space<vmem>>, vector<16x128xbf16>,
    return
  }
  func.func @transform_0(%arg0: i32) -> (i32, i32) {
    %c0_i32 = arith.constant 0 : i32
    %c0_i32_0 = arith.constant 0 : i32
    return %arg0, %c0_i32 : i32, i32
  }
  func.func @transform_1(%arg0: i32) -> (i32, i32) {
    %c0_i32 = arith.constant 0 : i32
    %c0_i32_0 = arith.constant 0 : i32
    %c0_i32_1 = arith.constant 0 : i32
    return %c0_i32, %c0_i32_0 : i32, i32
  }
  func.func @transform_2(%arg0: i32) -> (i32, i32) {
    %c0_i32 = arith.constant 0 : i32
    %c0_i32_0 = arith.constant 0 : i32
    %c0_i32_1 = arith.constant 0 : i32
    return %c0_i32, %c0_i32_0 : i32, i32
  }
  func.func @transform_3(%arg0: i32) -> (i32, i32) {
    %c0_i32 = arith.constant 0 : i32
    %c0_i32_0 = arith.constant 0 : i32
    %c0_i32_1 = arith.constant 0 : i32
    return %c0_i32, %c0_i32_0 : i32, i32
  }
  func.func @transform_4(%arg0: i32) -> (i32, i32) {
    %c0_i32 = arith.constant 0 : i32
    %c0_i32_0 = arith.constant 0 : i32
    %c0_i32_1 = arith.constant 0 : i32
    return %c0_i32, %c0_i32_0 : i32, i32
  }
  func.func @transform_5(%arg0: i32) -> (i32, i32) {
    %c0_i32 = arith.constant 0 : i32
    %c0_i32_0 = arith.constant 0 : i32
    %c0_i32_1 = arith.constant 0 : i32
    return %c0_i32, %c0_i32_0 : i32, i32
  }
  func.func @transform_6(%arg0: i32) -> (i32, i32) {
    %c0_i32 = arith.constant 0 : i32
    %c0_i32_0 = arith.constant 0 : i32
    %c0_i32_1 = arith.constant 0 : i32
    return %c0_i32, %c0_i32_0 : i32, i32
  }
  func.func @transform_7(%arg0: i32) -> (i32, i32) {
    %c0_i32 = arith.constant 0 : i32
    %c0_i32_0 = arith.constant 0 : i32
    %c0_i32_1 = arith.constant 0 : i32
    return %c0_i32, %c0_i32_0 : i32, i32
  }
  func.func @transform_8(%arg0: i32) -> (i32, i32) {
    %c0_i32 = arith.constant 0 : i32
    %c0_i32_0 = arith.constant 0 : i32
    %c0_i32_1 = arith.constant 0 : i32
    return %c0_i32, %c0_i32_0 : i32, i32
  }
  func.func @transform_9(%arg0: i32) -> (i32, i32) {
    %c0_i32 = arith.constant 0 : i32
    %c0_i32_0 = arith.constant 0 : i32
    return %arg0, %c0_i32 : i32, i32
  }
}

</mosaic_0001>

<bundles_post_ra>
// kernel: _forward_jit.1
= control target key start
LH: loop header
LB: loop body
LE: loop exit
PB: predicated region body
PF: predicated region fallthrough
CT: control target
= control target key end

     0   :  { %14 = vsyncpa [#allocation3], 0  ;;  %s4739_s0 = inlined_call_operand.vmem [shape: bf16[16,640], index: 0, kind: input, shape index: {}]   ;;  %s4740_s1 = inlined_call_operand.hbm [shape: bf16[640,640], index: 1, kind: input, shape index: {}]   ;;  %s4741_s2 = inlined_call_operand.vmem [shape: f32[1,640], index: 2, kind: input, shape index: {}]   ;;  %s4742_s3 = inlined_call_operand.hbm [shape: bf16[640,384], index: 3, kind: input, shape index: {}]   ;;  %s4743_s4 = inlined_call_operand.vmem [shape: f32[1,384], index: 4, kind: input, shape index: {}]   ;;  %s4744_s5 = inlined_call_operand.hbm [shape: bf16[384,128], index: 5, kind: input, shape index: {}]   ;;  %s4745_s6 = inlined_call_operand.vmem [shape: f32[1,128], index: 6, kind: input, shape index: {}]   ;;  %s4746_s7 = inlined_call_operand.vmem [shape: bf16[128,128], index: 7, kind: input, shape index: {}]   ;;  %s4747_s8 = inlined_call_operand.vmem [shape: f32[1,128], index: 8, kind: input, shape index: {}]   ;;  %s4748_s9 = inlined_call_operand.vmem [shape: bf16[16,128], index: 9, kind: output, shape index: {}]  }
   0x1   :  { %15 = vsyncpa [#allocation5], 0  ;;  %s4491_s30 = smov [#allocation4]   ;;  %s4421_s13 = scalar_lea.hbm %s4742_s3, 15360 }
   0x2   :  { %s37_s10 = sshll.u32 %s4491_s30, 4  ;;  %p4422_p0 = scmp.ne.s32.totalorder %s4742_s3, %s4421_s13  ;;  %s38_s10 = int_to_ptr.vmem [resolvable:$true] %s37_s10 }
   0x3   :  { %p4425_p1 = scmp.lt.u32.totalorder %s4421_s13, %s4742_s3 }
   0x5   :  { %p4427_p2 = pnand %p4425_p1, %p4422_p0 }
   0x7   :  { %4430 = shalt.err (!%p4427_p2)
}
   0x8   :  { %s4431_s18 = scalar_lea.vmem %s38_s10, 15360  ;;  %p4436_p4 = scmp.lt.s32.totalorder %s38_s10, %s38_s10 }
   0x9   :  { %p4432_p3 = scmp.ne.s32.totalorder %s38_s10, %s4431_s18  ;;  %p4437_p5 = scmp.lt.s32.totalorder %s4431_s18, %s4431_s18 }
   0xb   :  { %p4438_p6 = por %p4437_p5, %p4436_p4 }
   0xd   :  { %p4439_p7 = pnand %p4438_p6, %p4432_p3 }
   0xf   :  { %4442 = shalt.err (!%p4439_p7)
}
  0x10   :  { %s4492_s19 = smov 192   ;;  %s4493_s20 = smov 12  }
  0x11   :  { %43 = dma.hbm_to_vmem [thread:$0]  %s4742_s3, 15360, %s38_s10, [#allocation5], %s4492_s19, %s4492_s19, %s4493_s20  }
  0x12   :  { %s4494_s23 = smov [#allocation2]   ;;  %s4443_s27 = scalar_lea.hbm %s4740_s1, 25600 }
  0x13   :  { %s23_s24 = sshll.u32 %s4494_s23, 4  ;;  %p4444_p8 = scmp.ne.s32.totalorder %s4740_s1, %s4443_s27  ;;  %s24_s24 = int_to_ptr.vmem [resolvable:$true] %s23_s24 }
  0x14   :  { %p4447_p9 = scmp.lt.u32.totalorder %s4443_s27, %s4740_s1 }
  0x16   :  { %p4449_p10 = pnand %p4447_p9, %p4444_p8 }
  0x18   :  { %4452 = shalt.err (!%p4449_p10)
}
  0x19   :  { %s4453_s12 = scalar_lea.vmem %s24_s24, 25600  ;;  %p4458_p12 = scmp.lt.s32.totalorder %s24_s24, %s24_s24 }
  0x1a   :  { %p4454_p11 = scmp.ne.s32.totalorder %s24_s24, %s4453_s12  ;;  %p4459_p13 = scmp.lt.s32.totalorder %s4453_s12, %s4453_s12 }
  0x1c   :  { %p4460_p0 = por %p4459_p13, %p4458_p12 }
  0x1e   :  { %p4461_p1 = pnand %p4460_p0, %p4454_p11 }
  0x20   :  { %4464 = shalt.err (!%p4461_p1)
}
  0x21   :  { %s4495_s3 = smov 320   ;;  %s4496_s10 = smov 20  }
  0x22   :  { %29 = dma.hbm_to_vmem [thread:$0]  %s4740_s1, 25600, %s24_s24, [#allocation3], %s4495_s3, %s4495_s3, %s4496_s10  }
  0x23   :  { %s4497_s15 = smov [#allocation6]   ;;  %s4465_s19 = scalar_lea.hbm %s4744_s5, 3072 }
  0x24   :  { %s51_s16 = sshll.u32 %s4497_s15, 4  ;;  %p4466_p2 = scmp.ne.s32.totalorder %s4744_s5, %s4465_s19  ;;  %s52_s16 = int_to_ptr.vmem [resolvable:$true] %s51_s16 }
  0x25   :  { %p4469_p3 = scmp.lt.u32.totalorder %s4465_s19, %s4744_s5 }
  0x27   :  { %p4471_p4 = pnand %p4469_p3, %p4466_p2 }
  0x29   :  { %4474 = shalt.err (!%p4471_p4)
}
  0x2a   :  { %s4475_s25 = scalar_lea.vmem %s52_s16, 3072  ;;  %p4480_p6 = scmp.lt.s32.totalorder %s52_s16, %s52_s16 }
  0x2b   :  { %p4476_p5 = scmp.ne.s32.totalorder %s52_s16, %s4475_s25  ;;  %p4481_p7 = scmp.lt.s32.totalorder %s4475_s25, %s4475_s25 }
  0x2d   :  { %p4482_p8 = por %p4481_p7, %p4480_p6 }
  0x2f   :  { %p4483_p9 = pnand %p4482_p8, %p4476_p5 }
  0x31   :  { %4486 = shalt.err (!%p4483_p9)
}
  0x32   :  { %s4498_s1 = smov 64   ;;  %s4499_s24 = smov 4  }
  0x33   :  { %57 = dma.hbm_to_vmem [thread:$0]  %s4744_s5, 3072, %s52_s16, [#allocation5], %s4498_s1, %s4498_s1, %s4499_s24  }
  0x34   :  { %4487 = dma.done.wait [#allocation3], 25600  }
  0x35   :  { %4488 = vsyncadd [#allocation3], 4294941696 }
  0x36   :  { %4489 = dma.done.wait [#allocation5], 18432  }
  0x37   :  { %4490 = vsyncadd [#allocation5], 4294948864  ;;  %v3941_v0 = vld [vmem:[#allocation2 + $0x4] ss:$20 sps:$4 sm:$0xff]   ;;  %v3943_v1 = vld [vmem:[#allocation2 + $0xc] ss:$20 sps:$4 sm:$0xff]  }
  0x38   :  { %1413 = vmatprep.subr.bf16.mxu0 %v3941_v0  ;;  %v3945_v2 = vld [vmem:[#allocation2] ss:$20 sps:$4 sm:$0xff]   ;;  %v3946_v3 = vld [vmem:[#allocation2 + $0x8] ss:$20 sps:$4 sm:$0xff]   ;;  %1542 = vmatprep.subr.bf16.mxu1 %v3943_v1  ;;  %v3952_v7 = vld [vmem:[#allocation2 + $0x30] ss:$20 sps:$4 sm:$0xff]  }
  0x39   :  { %v3947_v4 = vld [vmem:[#allocation2 + $0x2c] ss:$20 sps:$4 sm:$0xff]   ;;  %1414 = vmatpush1.bf16.msra.mxu0 %v3945_v2  ;;  %1543 = vmatpush1.bf16.msra.mxu1 %v3946_v3  ;;  %v3949_v5 = vld [vmem:[#allocation2 + $0x34] ss:$20 sps:$4 sm:$0xff]   ;;  %v3955_v9 = vld [vmem:[#allocation2 + $0x5c] ss:$20 sps:$4 sm:$0xff]  }
  0x3a   :  { %v3951_v6 = vld [vmem:[#allocation2 + $0x28] ss:$20 sps:$4 sm:$0xff]   ;;  %1415 = vmatprep.subr.bf16.mxu0 %v3947_v4  ;;  %1544 = vmatprep.subr.bf16.mxu1 %v3949_v5  ;;  %v3957_v10 = vld [vmem:[#allocation2 + $0x50] ss:$20 sps:$4 sm:$0xff]   ;;  %v3958_v11 = vld [vmem:[#allocation2 + $0x58] ss:$20 sps:$4 sm:$0xff]  }
  0x3b   :  { %v3953_v8 = vld [vmem:[#allocation2 + $0x54] ss:$20 sps:$4 sm:$0xff]   ;;  %v3959_v12 = vld [vmem:[#allocation2 + $0x7c] ss:$20 sps:$4 sm:$0xff]   ;;  %v3961_v13 = vld [vmem:[#allocation2 + $0x84] ss:$20 sps:$4 sm:$0xff]  }
  0x3c   :  { %v3963_v14 = vld [vmem:[#allocation2 + $0x78] ss:$20 sps:$4 sm:$0xff]   ;;  %v3964_v15 = vld [vmem:[#allocation2 + $0x80] ss:$20 sps:$4 sm:$0xff]   ;;  %v3970_v19 = vld [vmem:[#allocation2 + $0xa8] ss:$20 sps:$4 sm:$0xff]  }
  0x3d   :  { %1416 = vmatpush1.bf16.msra.mxu0 %v3951_v6  ;;  %1545 = vmatpush1.bf16.msra.mxu1 %v3952_v7  ;;  %v3965_v16 = vld [vmem:[#allocation2 + $0xa4] ss:$20 sps:$4 sm:$0xff]   ;;  %v3967_v17 = vld [vmem:[#allocation2 + $0xac] ss:$20 sps:$4 sm:$0xff]   ;;  %v3973_v21 = vld [vmem:[#allocation2 + $0xd4] ss:$20 sps:$4 sm:$0xff]  }
  0x3e   :  { %1417 = vmatprep.subr.bf16.mxu0 %v3953_v8  ;;  %1546 = vmatprep.subr.bf16.mxu1 %v3955_v9  ;;  %v3969_v18 = vld [vmem:[#allocation2 + $0xa0] ss:$20 sps:$4 sm:$0xff]   ;;  %v3975_v22 = vld [vmem:[#allocation2 + $0xc8] ss:$20 sps:$4 sm:$0xff]   ;;  %v3976_v23 = vld [vmem:[#allocation2 + $0xd0] ss:$20 sps:$4 sm:$0xff]  }
  0x3f   :  { %v3971_v20 = vld [vmem:[#allocation2 + $0xcc] ss:$20 sps:$4 sm:$0xff]   ;;  %v3977_v24 = vld [vmem:[#allocation2 + $0xf4] ss:$20 sps:$4 sm:$0xff]   ;;  %v3979_v25 = vld [vmem:[#allocation2 + $0xfc] ss:$20 sps:$4 sm:$0xff]  }
  0x40   :  { %v3981_v26 = vld [vmem:[#allocation2 + $0xf0] ss:$20 sps:$4 sm:$0xff]   ;;  %v3982_v27 = vld [vmem:[#allocation2 + $0xf8] ss:$20 sps:$4 sm:$0xff]   ;;  %v3988_v31 = vld [vmem:[#allocation2 + $0x120] ss:$20 sps:$4 sm:$0xff]  }
  0x41   :  { %1418 = vmatpush1.bf16.msra.mxu0 %v3957_v10  ;;  %1547 = vmatpush1.bf16.msra.mxu1 %v3958_v11  ;;  %v3983_v28 = vld [vmem:[#allocation2 + $0x11c] ss:$20 sps:$4 sm:$0xff]   ;;  %v3985_v29 = vld [vmem:[#allocation2 + $0x124] ss:$20 sps:$4 sm:$0xff]   ;;  %v3991_v33 = vld [vmem:[#allocation2 + $0x14c] ss:$20 sps:$4 sm:$0xff]  }
  0x42   :  { %1419 = vmatprep.subr.bf16.mxu0 %v3959_v12  ;;  %1548 = vmatprep.subr.bf16.mxu1 %v3961_v13  ;;  %v3987_v30 = vld [vmem:[#allocation2 + $0x118] ss:$20 sps:$4 sm:$0xff]   ;;  %v3993_v34 = vld [vmem:[#allocation2 + $0x140] ss:$20 sps:$4 sm:$0xff]   ;;  %v3994_v35 = vld [vmem:[#allocation2 + $0x148] ss:$20 sps:$4 sm:$0xff]  }
  0x43   :  { %v3989_v32 = vld [vmem:[#allocation2 + $0x144] ss:$20 sps:$4 sm:$0xff]   ;;  %v3995_v36 = vld [vmem:[#allocation2 + $0x16c] ss:$20 sps:$4 sm:$0xff]   ;;  %v3997_v37 = vld [vmem:[#allocation2 + $0x174] ss:$20 sps:$4 sm:$0xff]  }
  0x44   :  { %v3999_v38 = vld [vmem:[#allocation2 + $0x168] ss:$20 sps:$4 sm:$0xff]   ;;  %v4000_v39 = vld [vmem:[#allocation2 + $0x170] ss:$20 sps:$4 sm:$0xff]   ;;  %v4006_v43 = vld [vmem:[#allocation2 + $0x198] ss:$20 sps:$4 sm:$0xff]  }
  0x45   :  { %1420 = vmatpush1.bf16.msra.mxu0 %v3963_v14  ;;  %1549 = vmatpush1.bf16.msra.mxu1 %v3964_v15  ;;  %v4001_v40 = vld [vmem:[#allocation2 + $0x194] ss:$20 sps:$4 sm:$0xff]   ;;  %v4003_v41 = vld [vmem:[#allocation2 + $0x19c] ss:$20 sps:$4 sm:$0xff]   ;;  %v4009_v45 = vld [vmem:[#allocation2 + $0x1c4] ss:$20 sps:$4 sm:$0xff]  }
  0x46   :  { %1421 = vmatprep.subr.bf16.mxu0 %v3965_v16  ;;  %1550 = vmatprep.subr.bf16.mxu1 %v3967_v17  ;;  %v4005_v42 = vld [vmem:[#allocation2 + $0x190] ss:$20 sps:$4 sm:$0xff]   ;;  %v4011_v46 = vld [vmem:[#allocation2 + $0x1b8] ss:$20 sps:$4 sm:$0xff]   ;;  %v4012_v48 = vld [vmem:[#allocation2 + $0x1c0] ss:$20 sps:$4 sm:$0xff]  }
  0x47   :  { %v4007_v44 = vld [vmem:[#allocation2 + $0x1bc] ss:$20 sps:$4 sm:$0xff]   ;;  %v4592_v47 = vld [vmem:[%s4739_s0 + $0x4] ss:$20 sps:$4 sm:$0xff]   ;;  %v4015_v50 = vld [vmem:[#allocation2 + $0x1ec] ss:$20 sps:$4 sm:$0xff]  }
  0x48   :  { %v4013_v49 = vld [vmem:[#allocation2 + $0x1e4] ss:$20 sps:$4 sm:$0xff]   ;;  %1445 = vmatprep.mubr.bf16.mxu0 %v4592_v47  ;;  %1574 = vmatprep.mubr.bf16.mxu1 %v4592_v47  ;;  %v4017_v51 = vld [vmem:[#allocation2 + $0x1e0] ss:$20 sps:$4 sm:$0xff]   ;;  %v4018_v52 = vld [vmem:[#allocation2 + $0x1e8] ss:$20 sps:$4 sm:$0xff]  }
  0x49   :  { %1422 = vmatpush1.bf16.msra.mxu0 %v3969_v18  ;;  %1551 = vmatpush1.bf16.msra.mxu1 %v3970_v19  ;;  %v4019_v53 = vld [vmem:[#allocation2 + $0x20c] ss:$20 sps:$4 sm:$0xff]   ;;  %v4021_v54 = vld [vmem:[#allocation2 + $0x214] ss:$20 sps:$4 sm:$0xff]   ;;  %v4024_v56 = vld [vmem:[#allocation2 + $0x210] ss:$20 sps:$4 sm:$0xff]  }
  0x4a   :  { %1423 = vmatprep.subr.bf16.mxu0 %v3971_v20  ;;  %1552 = vmatprep.subr.bf16.mxu1 %v3973_v21  ;;  %v4023_v55 = vld [vmem:[#allocation2 + $0x208] ss:$20 sps:$4 sm:$0xff]   ;;  %v4029_v59 = vld [vmem:[#allocation2 + $0x230] ss:$20 sps:$4 sm:$0xff]   ;;  %v4030_v60 = vld [vmem:[#allocation2 + $0x238] ss:$20 sps:$4 sm:$0xff]  }
  0x4b   :  { %v4025_v57 = vld [vmem:[#allocation2 + $0x234] ss:$20 sps:$4 sm:$0xff]   ;;  %v4027_v58 = vld [vmem:[#allocation2 + $0x23c] ss:$20 sps:$4 sm:$0xff]   ;;  %v4033_v62 = vld [vmem:[#allocation2 + $0x264] ss:$20 sps:$4 sm:$0xff]  }
  0x4c   :  { %v4031_v61 = vld [vmem:[#allocation2 + $0x25c] ss:$20 sps:$4 sm:$0xff]   ;;  %v4035_v63 = vld [vmem:[#allocation2 + $0x258] ss:$20 sps:$4 sm:$0xff]   ;;  %v4036_v0 = vld [vmem:[#allocation2 + $0x260] ss:$20 sps:$4 sm:$0xff]  }
  0x4d   :  { %1424 = vmatpush1.bf16.msra.mxu0 %v3975_v22  ;;  %1553 = vmatpush1.bf16.msra.mxu1 %v3976_v23  ;;  %v4041_v1 = vld [vmem:[#allocation2 + $0x284] ss:$20 sps:$4 sm:$0xff]   ;;  %v4044_v2 = vld [vmem:[#allocation2 + $0x28c] ss:$20 sps:$4 sm:$0xff]   ;;  %v4042_v4 = vld [vmem:[#allocation2 + $0x288] ss:$20 sps:$4 sm:$0xff]  }
  0x4e   :  { %1425 = vmatprep.subr.bf16.mxu0 %v3977_v24  ;;  %1554 = vmatprep.subr.bf16.mxu1 %v3979_v25  ;;  %v4039_v3 = vld [vmem:[#allocation2 + $0x280] ss:$20 sps:$4 sm:$0xff]   ;;  %v4046_v8 = vld [vmem:[#allocation2 + $0x2a8] ss:$20 sps:$4 sm:$0xff]   ;;  %v4049_v9 = vld [vmem:[#allocation2 + $0x2b0] ss:$20 sps:$4 sm:$0xff]  }
  0x4f   :  { %v4045_v5 = vld [vmem:[%s4739_s0] ss:$20 sps:$4 sm:$0xff]   ;;  %v4057_v11 = vld [vmem:[#allocation2 + $0x2dc] ss:$20 sps:$4 sm:$0xff]   ;;  %v4055_v13 = vld [vmem:[#allocation2 + $0x2d8] ss:$20 sps:$4 sm:$0xff]  }
  0x50   :  { %v4048_v6 = vld [vmem:[#allocation2 + $0x2ac] ss:$20 sps:$4 sm:$0xff]   ;;  %v4051_v7 = vld [vmem:[#allocation2 + $0x2b4] ss:$20 sps:$4 sm:$0xff]   ;;  %v4052_v12 = vld [vmem:[#allocation2 + $0x2d0] ss:$20 sps:$4 sm:$0xff]  }
  0x51   :  { %1426 = vmatpush1.bf16.msra.mxu0 %v3981_v26  ;;  %1555 = vmatpush1.bf16.msra.mxu1 %v3982_v27  ;;  %v4054_v10 = vld [vmem:[#allocation2 + $0x2d4] ss:$20 sps:$4 sm:$0xff]   ;;  %v4060_v14 = vld [vmem:[#allocation2 + $0x2fc] ss:$20 sps:$4 sm:$0xff]   ;;  %v4063_v15 = vld [vmem:[#allocation2 + $0x304] ss:$20 sps:$4 sm:$0xff]  }
  0x52   :  { %1427 = vmatprep.subr.bf16.mxu0 %v3983_v28  ;;  %1556 = vmatprep.subr.bf16.mxu1 %v3985_v29  ;;  %v4058_v16 = vld [vmem:[#allocation2 + $0x2f8] ss:$20 sps:$4 sm:$0xff]   ;;  %v4061_v17 = vld [vmem:[#allocation2 + $0x300] ss:$20 sps:$4 sm:$0xff]   ;;  %v4067_v21 = vld [vmem:[#allocation2 + $0x328] ss:$20 sps:$4 sm:$0xff]  }
  0x53   :  { %v4066_v18 = vld [vmem:[#allocation2 + $0x324] ss:$20 sps:$4 sm:$0xff]   ;;  %v4069_v19 = vld [vmem:[#allocation2 + $0x32c] ss:$20 sps:$4 sm:$0xff]   ;;  %v4075_v23 = vld [vmem:[#allocation2 + $0x354] ss:$20 sps:$4 sm:$0xff]  }
  0x54   :  { %v4064_v20 = vld [vmem:[#allocation2 + $0x320] ss:$20 sps:$4 sm:$0xff]   ;;  %v4070_v24 = vld [vmem:[#allocation2 + $0x348] ss:$20 sps:$4 sm:$0xff]   ;;  %v4073_v25 = vld [vmem:[#allocation2 + $0x350] ss:$20 sps:$4 sm:$0xff]  }
  0x55   :  { %1428 = vmatpush1.bf16.msra.mxu0 %v3987_v30  ;;  %1557 = vmatpush1.bf16.msra.mxu1 %v3988_v31  ;;  %v4072_v22 = vld [vmem:[#allocation2 + $0x34c] ss:$20 sps:$4 sm:$0xff]   ;;  %v4078_v26 = vld [vmem:[#allocation2 + $0x374] ss:$20 sps:$4 sm:$0xff]   ;;  %v4081_v27 = vld [vmem:[#allocation2 + $0x37c] ss:$20 sps:$4 sm:$0xff]  }
  0x56   :  { %1429 = vmatprep.subr.bf16.mxu0 %v3989_v32  ;;  %1558 = vmatprep.subr.bf16.mxu1 %v3991_v33  ;;  %v4076_v28 = vld [vmem:[#allocation2 + $0x370] ss:$20 sps:$4 sm:$0xff]   ;;  %v4079_v29 = vld [vmem:[#allocation2 + $0x378] ss:$20 sps:$4 sm:$0xff]   ;;  %vm4502_vm0 = vmmov 0  }
  0x57   :  { %v4602_v30 = vld [vmem:[%s4739_s0 + $0xc] ss:$20 sps:$4 sm:$0xff]   ;;  %v4084_v31 = vld [vmem:[#allocation2 + $0x39c] ss:$20 sps:$4 sm:$0xff]   ;;  %v4087_v32 = vld [vmem:[#allocation2 + $0x3a4] ss:$20 sps:$4 sm:$0xff]  }
  0x58   :  { %v4082_v33 = vld [vmem:[#allocation2 + $0x398] ss:$20 sps:$4 sm:$0xff]  }
  0x59   :  { %1430 = vmatpush1.bf16.msra.mxu0 %v3993_v34  ;;  %1559 = vmatpush1.bf16.msra.mxu1 %v3994_v35  ;;  %v4085_v34 = vld [vmem:[#allocation2 + $0x3a0] ss:$20 sps:$4 sm:$0xff]   ;;  %v4090_v35 = vld [vmem:[#allocation2 + $0x3c4] ss:$20 sps:$4 sm:$0xff]  }
  0x5a   :  { %1431 = vmatprep.subr.bf16.mxu0 %v3995_v36  ;;  %1560 = vmatprep.subr.bf16.mxu1 %v3997_v37  ;;  %v4093_v36 = vld [vmem:[#allocation2 + $0x3cc] ss:$20 sps:$4 sm:$0xff]  }
  0x5b   :  { %v4088_v37 = vld [vmem:[#allocation2 + $0x3c0] ss:$20 sps:$4 sm:$0xff]  }
  0x5d   :  { %1432 = vmatpush1.bf16.msra.mxu0 %v3999_v38  ;;  %1561 = vmatpush1.bf16.msra.mxu1 %v4000_v39  ;;  %v4091_v38 = vld [vmem:[#allocation2 + $0x3c8] ss:$20 sps:$4 sm:$0xff]   ;;  %v4096_v39 = vld [vmem:[#allocation2 + $0x3ec] ss:$20 sps:$4 sm:$0xff]  }
  0x5e   :  { %1433 = vmatprep.subr.bf16.mxu0 %v4001_v40  ;;  %1562 = vmatprep.subr.bf16.mxu1 %v4003_v41  ;;  %v4099_v40 = vld [vmem:[#allocation2 + $0x3f4] ss:$20 sps:$4 sm:$0xff]  }
  0x5f   :  { %v4094_v41 = vld [vmem:[#allocation2 + $0x3e8] ss:$20 sps:$4 sm:$0xff]  }
  0x61   :  { %1434 = vmatpush1.bf16.msra.mxu0 %v4005_v42  ;;  %1563 = vmatpush1.bf16.msra.mxu1 %v4006_v43  ;;  %v4097_v42 = vld [vmem:[#allocation2 + $0x3f0] ss:$20 sps:$4 sm:$0xff]   ;;  %v4102_v43 = vld [vmem:[#allocation2 + $0x414] ss:$20 sps:$4 sm:$0xff]  }
  0x62   :  { %1435 = vmatprep.subr.bf16.mxu0 %v4007_v44  ;;  %1564 = vmatprep.subr.bf16.mxu1 %v4009_v45  ;;  %v4105_v44 = vld [vmem:[#allocation2 + $0x41c] ss:$20 sps:$4 sm:$0xff]  }
  0x63   :  { %v4100_v45 = vld [vmem:[#allocation2 + $0x410] ss:$20 sps:$4 sm:$0xff]  }
  0x65   :  { %1436 = vmatpush1.bf16.msra.mxu0 %v4011_v46  ;;  %1565 = vmatpush1.bf16.msra.mxu1 %v4012_v48  ;;  %v4103_v46 = vld [vmem:[#allocation2 + $0x418] ss:$20 sps:$4 sm:$0xff]   ;;  %v4108_v48 = vld [vmem:[#allocation2 + $0x43c] ss:$20 sps:$4 sm:$0xff]  }
  0x66   :  { %1437 = vmatprep.subr.bf16.mxu0 %v4013_v49  ;;  %1566 = vmatprep.subr.bf16.mxu1 %v4015_v50  ;;  %v4111_v49 = vld [vmem:[#allocation2 + $0x444] ss:$20 sps:$4 sm:$0xff]  }
  0x67   :  { %v4106_v50 = vld [vmem:[#allocation2 + $0x438] ss:$20 sps:$4 sm:$0xff]  }
  0x69   :  { %1438 = vmatpush1.bf16.msra.mxu0 %v4017_v51  ;;  %1567 = vmatpush1.bf16.msra.mxu1 %v4018_v52  ;;  %v4109_v51 = vld [vmem:[#allocation2 + $0x440] ss:$20 sps:$4 sm:$0xff]   ;;  %v4114_v52 = vld [vmem:[#allocation2 + $0x464] ss:$20 sps:$4 sm:$0xff]  }
  0x6a   :  { %1439 = vmatprep.subr.bf16.mxu0 %v4019_v53  ;;  %1568 = vmatprep.subr.bf16.mxu1 %v4021_v54  ;;  %v4117_v53 = vld [vmem:[#allocation2 + $0x46c] ss:$20 sps:$4 sm:$0xff]  }
  0x6b   :  { %v4112_v54 = vld [vmem:[#allocation2 + $0x460] ss:$20 sps:$4 sm:$0xff]  }
  0x6d   :  { %1440 = vmatpush1.bf16.msra.mxu0 %v4023_v55  ;;  %1569 = vmatpush1.bf16.msra.mxu1 %v4024_v56  ;;  %v4115_v55 = vld [vmem:[#allocation2 + $0x468] ss:$20 sps:$4 sm:$0xff]   ;;  %v4120_v56 = vld [vmem:[#allocation2 + $0x48c] ss:$20 sps:$4 sm:$0xff]  }
  0x6e   :  { %1441 = vmatprep.subr.bf16.mxu0 %v4025_v57  ;;  %1570 = vmatprep.subr.bf16.mxu1 %v4027_v58  ;;  %v4123_v57 = vld [vmem:[#allocation2 + $0x494] ss:$20 sps:$4 sm:$0xff]  }
  0x6f   :  { %v4118_v58 = vld [vmem:[#allocation2 + $0x488] ss:$20 sps:$4 sm:$0xff]  }
  0x71   :  { %1442 = vmatpush1.bf16.msra.mxu0 %v4029_v59  ;;  %1571 = vmatpush1.bf16.msra.mxu1 %v4030_v60  ;;  %v4121_v59 = vld [vmem:[#allocation2 + $0x490] ss:$20 sps:$4 sm:$0xff]   ;;  %v4126_v60 = vld [vmem:[#allocation2 + $0x4b4] ss:$20 sps:$4 sm:$0xff]  }
  0x72   :  { %1443 = vmatprep.subr.bf16.mxu0 %v4031_v61  ;;  %1572 = vmatprep.subr.bf16.mxu1 %v4033_v62  ;;  %v4129_v61 = vld [vmem:[#allocation2 + $0x4bc] ss:$20 sps:$4 sm:$0xff]  }
  0x73   :  { %v4124_v62 = vld [vmem:[#allocation2 + $0x4b0] ss:$20 sps:$4 sm:$0xff]  }
  0x75   :  { %1444 = vmatpush1.bf16.msra.mxu0 %v4035_v63  ;;  %1573 = vmatpush1.bf16.msra.mxu1 %v4036_v0  ;;  %v4127_v63 = vld [vmem:[#allocation2 + $0x4b8] ss:$20 sps:$4 sm:$0xff]   ;;  %v4132_v0 = vld [vmem:[#allocation2 + $0x4dc] ss:$20 sps:$4 sm:$0xff]  }
  0x76   :  { %1456 = vmatprep.subr.bf16.mxu0 %v4041_v1  ;;  %1585 = vmatprep.subr.bf16.mxu1 %v4044_v2  ;;  %v4135_v1 = vld [vmem:[#allocation2 + $0x4e4] ss:$20 sps:$4 sm:$0xff]  }
  0x77   :  { %v4130_v2 = vld [vmem:[#allocation2 + $0x4d8] ss:$20 sps:$4 sm:$0xff]  }
  0x78   :  { %1446 = vmatmul.mubr.bf16.vlgmr.msra.gmra.mrb[0].mxu0 %v4045_v5  ;;  %1575 = vmatmul.mubr.bf16.vlgmr.msra.gmra.mrb[0].mxu1 %v4045_v5  ;;  %v4609_v5 = vld [vmem:[%s4739_s0 + $0x8] ss:$20 sps:$4 sm:$0xff]  }
  0x79   :  { %1457 = vmatpush1.bf16.msra.mxu0 %v4039_v3  ;;  %1586 = vmatpush1.bf16.msra.mxu1 %v4042_v4  ;;  %v4133_v3 = vld [vmem:[#allocation2 + $0x4e0] ss:$20 sps:$4 sm:$0xff]   ;;  %v4141_v4 = vld [vmem:[#allocation2 + $0x504] ss:$20 sps:$4 sm:$0xff]  }
  0x7a   :  { %1458 = vmatprep.subr.bf16.mxu0 %v4048_v6  ;;  %1587 = vmatprep.subr.bf16.mxu1 %v4051_v7  ;;  %v4144_v6 = vld [vmem:[#allocation2 + $0x50c] ss:$20 sps:$4 sm:$0xff]  }
  0x7b   :  { %1488 = vmatprep.mubr.bf16.mxu0 %v4602_v30  ;;  %1617 = vmatprep.mubr.bf16.mxu1 %v4602_v30  ;;  %v4139_v7 = vld [vmem:[#allocation2 + $0x500] ss:$20 sps:$4 sm:$0xff]  }
  0x7d   :  { %1459 = vmatpush1.bf16.msra.mxu0 %v4046_v8  ;;  %1588 = vmatpush1.bf16.msra.mxu1 %v4049_v9  ;;  %v4142_v8 = vld [vmem:[#allocation2 + $0x508] ss:$20 sps:$4 sm:$0xff]   ;;  %v4147_v9 = vld [vmem:[#allocation2 + $0x52c] ss:$20 sps:$4 sm:$0xff]  }
  0x7e   :  { %1460 = vmatprep.subr.bf16.mxu0 %v4054_v10  ;;  %1589 = vmatprep.subr.bf16.mxu1 %v4057_v11  ;;  %v4150_v10 = vld [vmem:[#allocation2 + $0x534] ss:$20 sps:$4 sm:$0xff]  }
  0x7f   :  { %v4145_v11 = vld [vmem:[#allocation2 + $0x528] ss:$20 sps:$4 sm:$0xff]  }
  0x81   :  { %1461 = vmatpush1.bf16.msra.mxu0 %v4052_v12  ;;  %1590 = vmatpush1.bf16.msra.mxu1 %v4055_v13  ;;  %v4148_v12 = vld [vmem:[#allocation2 + $0x530] ss:$20 sps:$4 sm:$0xff]   ;;  %v4153_v13 = vld [vmem:[#allocation2 + $0x554] ss:$20 sps:$4 sm:$0xff]  }
  0x82   :  { %1462 = vmatprep.subr.bf16.mxu0 %v4060_v14  ;;  %1591 = vmatprep.subr.bf16.mxu1 %v4063_v15  ;;  %v4156_v14 = vld [vmem:[#allocation2 + $0x55c] ss:$20 sps:$4 sm:$0xff]  }
  0x83   :  { %v4151_v15 = vld [vmem:[#allocation2 + $0x550] ss:$20 sps:$4 sm:$0xff]  }
  0x85   :  { %1463 = vmatpush1.bf16.msra.mxu0 %v4058_v16  ;;  %1592 = vmatpush1.bf16.msra.mxu1 %v4061_v17  ;;  %v4500_v16 = vmov 0   ;;  %v4154_v17 = vld [vmem:[#allocation2 + $0x558] ss:$20 sps:$4 sm:$0xff]  }
  0x86   :  { %1464 = vmatprep.subr.bf16.mxu0 %v4066_v18  ;;  %1593 = vmatprep.subr.bf16.mxu1 %v4069_v19  ;;  %v4159_v18 = vld [vmem:[#allocation2 + $0x57c] ss:$20 sps:$4 sm:$0xff]   ;;  %v4162_v19 = vld [vmem:[#allocation2 + $0x584] ss:$20 sps:$4 sm:$0xff]  }
  0x89   :  { %1465 = vmatpush1.bf16.msra.mxu0 %v4064_v20  ;;  %1594 = vmatpush1.bf16.msra.mxu1 %v4067_v21  ;;  %v4157_v20 = vld [vmem:[#allocation2 + $0x578] ss:$20 sps:$4 sm:$0xff]   ;;  %v4160_v21 = vld [vmem:[#allocation2 + $0x580] ss:$20 sps:$4 sm:$0xff]  }
  0x8a   :  { %1466 = vmatprep.subr.bf16.mxu0 %v4072_v22  ;;  %1595 = vmatprep.subr.bf16.mxu1 %v4075_v23  ;;  %v4165_v22 = vld [vmem:[#allocation2 + $0x5a4] ss:$20 sps:$4 sm:$0xff]   ;;  %v4168_v23 = vld [vmem:[#allocation2 + $0x5ac] ss:$20 sps:$4 sm:$0xff]  }
  0x8d   :  { %1467 = vmatpush1.bf16.msra.mxu0 %v4070_v24  ;;  %1596 = vmatpush1.bf16.msra.mxu1 %v4073_v25  ;;  %v4163_v24 = vld [vmem:[#allocation2 + $0x5a0] ss:$20 sps:$4 sm:$0xff]   ;;  %v4166_v25 = vld [vmem:[#allocation2 + $0x5a8] ss:$20 sps:$4 sm:$0xff]  }
  0x8e   :  { %1468 = vmatprep.subr.bf16.mxu0 %v4078_v26  ;;  %1597 = vmatprep.subr.bf16.mxu1 %v4081_v27  ;;  %v4171_v26 = vld [vmem:[#allocation2 + $0x5cc] ss:$20 sps:$4 sm:$0xff]   ;;  %v4174_v27 = vld [vmem:[#allocation2 + $0x5d4] ss:$20 sps:$4 sm:$0xff]  }
  0x91   :  { %1469 = vmatpush1.bf16.msra.mxu0 %v4076_v28  ;;  %1598 = vmatpush1.bf16.msra.mxu1 %v4079_v29  ;;  %v4169_v28 = vld [vmem:[#allocation2 + $0x5c8] ss:$20 sps:$4 sm:$0xff]   ;;  %v4172_v29 = vld [vmem:[#allocation2 + $0x5d0] ss:$20 sps:$4 sm:$0xff]  }
  0x92   :  { %1470 = vmatprep.subr.bf16.mxu0 %v4084_v31  ;;  %1599 = vmatprep.subr.bf16.mxu1 %v4087_v32  ;;  %v4177_v31 = vld [vmem:[#allocation2 + $0x5f4] ss:$20 sps:$4 sm:$0xff]   ;;  %v4180_v32 = vld [vmem:[#allocation2 + $0x5fc] ss:$20 sps:$4 sm:$0xff]  }
  0x95   :  { %1471 = vmatpush1.bf16.msra.mxu0 %v4082_v33  ;;  %1600 = vmatpush1.bf16.msra.mxu1 %v4085_v34  ;;  %v4175_v33 = vld [vmem:[#allocation2 + $0x5f0] ss:$20 sps:$4 sm:$0xff]   ;;  %v4178_v34 = vld [vmem:[#allocation2 + $0x5f8] ss:$20 sps:$4 sm:$0xff]  }
  0x96   :  { %1472 = vmatprep.subr.bf16.mxu0 %v4090_v35  ;;  %1601 = vmatprep.subr.bf16.mxu1 %v4093_v36  ;;  %v4183_v35 = vld [vmem:[#allocation2 + $0x61c] ss:$20 sps:$4 sm:$0xff]   ;;  %v4186_v36 = vld [vmem:[#allocation2 + $0x624] ss:$20 sps:$4 sm:$0xff]  }
  0x99   :  { %1473 = vmatpush1.bf16.msra.mxu0 %v4088_v37  ;;  %1602 = vmatpush1.bf16.msra.mxu1 %v4091_v38  ;;  %v4181_v37 = vld [vmem:[#allocation2 + $0x618] ss:$20 sps:$4 sm:$0xff]   ;;  %v4184_v38 = vld [vmem:[#allocation2 + $0x620] ss:$20 sps:$4 sm:$0xff]  }
  0x9a   :  { %1474 = vmatprep.subr.bf16.mxu0 %v4096_v39  ;;  %1603 = vmatprep.subr.bf16.mxu1 %v4099_v40  ;;  %v4188_v39 = vld [vmem:[#allocation2 + $0x150] ss:$20 sps:$4 sm:$0xff]  }
  0x9b   :  { %v4202_v40 = vld [vmem:[#allocation2 + $0x3d0] ss:$20 sps:$4 sm:$0xff]  }
  0x9d   :  { %1475 = vmatpush1.bf16.msra.mxu0 %v4094_v41  ;;  %1604 = vmatpush1.bf16.msra.mxu1 %v4097_v42  ;;  %v4618_v41 = vld [vmem:[%s4739_s0 + $0x10] ss:$20 sps:$4 sm:$0xff]  }
  0x9e   :  { %1476 = vmatprep.subr.bf16.mxu0 %v4102_v43  ;;  %1605 = vmatprep.subr.bf16.mxu1 %v4105_v44  ;;  %v4189_v42 = vld [vmem:[#allocation2 + $0x10] ss:$20 sps:$4 sm:$0xff]   ;;  %v4190_v43 = vld [vmem:[#allocation2 + $0x178] ss:$20 sps:$4 sm:$0xff]  }
  0x9f   :  { %v4204_v44 = vld [vmem:[#allocation2 + $0x290] ss:$20 sps:$4 sm:$0xff]  }
  0xa1   :  { %1477 = vmatpush1.bf16.msra.mxu0 %v4100_v45  ;;  %1606 = vmatpush1.bf16.msra.mxu1 %v4103_v46  ;;  %v4206_v45 = vld [vmem:[#allocation2 + $0x3f8] ss:$20 sps:$4 sm:$0xff]  }
  0xa2   :  { %1478 = vmatprep.subr.bf16.mxu0 %v4108_v48  ;;  %1607 = vmatprep.subr.bf16.mxu1 %v4111_v49  ;;  %v4191_v46 = vld [vmem:[#allocation2 + $0x38] ss:$20 sps:$4 sm:$0xff]   ;;  %v4192_v49 = vld [vmem:[#allocation2 + $0x1a0] ss:$20 sps:$4 sm:$0xff]  }
  0xa3   :  { %v4207_v48 = vld [vmem:[#allocation2 + $0x2b8] ss:$20 sps:$4 sm:$0xff]  }
  0xa5   :  { %1479 = vmatpush1.bf16.msra.mxu0 %v4106_v50  ;;  %1608 = vmatpush1.bf16.msra.mxu1 %v4109_v51  ;;  %v4209_v50 = vld [vmem:[#allocation2 + $0x420] ss:$20 sps:$4 sm:$0xff]  }
  0xa6   :  { %1480 = vmatprep.subr.bf16.mxu0 %v4114_v52  ;;  %1609 = vmatprep.subr.bf16.mxu1 %v4117_v53  ;;  %v4193_v51 = vld [vmem:[#allocation2 + $0x60] ss:$20 sps:$4 sm:$0xff]   ;;  %v4194_v52 = vld [vmem:[#allocation2 + $0x1c8] ss:$20 sps:$4 sm:$0xff]  }
  0xa7   :  { %v4210_v53 = vld [vmem:[#allocation2 + $0x2e0] ss:$20 sps:$4 sm:$0xff]  }
  0xa9   :  { %1481 = vmatpush1.bf16.msra.mxu0 %v4112_v54  ;;  %1610 = vmatpush1.bf16.msra.mxu1 %v4115_v55  ;;  %v4212_v54 = vld [vmem:[#allocation2 + $0x448] ss:$20 sps:$4 sm:$0xff]  }
  0xaa   :  { %1482 = vmatprep.subr.bf16.mxu0 %v4120_v56  ;;  %1611 = vmatprep.subr.bf16.mxu1 %v4123_v57  ;;  %v4195_v55 = vld [vmem:[#allocation2 + $0x88] ss:$20 sps:$4 sm:$0xff]   ;;  %v4196_v56 = vld [vmem:[#allocation2 + $0x1f0] ss:$20 sps:$4 sm:$0xff]  }
  0xab   :  { %v4213_v57 = vld [vmem:[#allocation2 + $0x308] ss:$20 sps:$4 sm:$0xff]  }
  0xad   :  { %1483 = vmatpush1.bf16.msra.mxu0 %v4118_v58  ;;  %1612 = vmatpush1.bf16.msra.mxu1 %v4121_v59  ;;  %v4215_v58 = vld [vmem:[#allocation2 + $0x470] ss:$20 sps:$4 sm:$0xff]  }
  0xae   :  { %1484 = vmatprep.subr.bf16.mxu0 %v4126_v60  ;;  %1613 = vmatprep.subr.bf16.mxu1 %v4129_v61  ;;  %v4197_v59 = vld [vmem:[#allocation2 + $0xb0] ss:$20 sps:$4 sm:$0xff]   ;;  %v4218_v60 = vld [vmem:[#allocation2 + $0x498] ss:$20 sps:$4 sm:$0xff]  }
  0xaf   :  { %v4199_v61 = vld [vmem:[#allocation2 + $0xd8] ss:$20 sps:$4 sm:$0xff]  }
  0xb1   :  { %1485 = vmatpush1.bf16.msra.mxu0 %v4124_v62  ;;  %1614 = vmatpush1.bf16.msra.mxu1 %v4127_v63  ;;  %v4200_v62 = vld [vmem:[#allocation2 + $0x240] ss:$20 sps:$4 sm:$0xff]   ;;  %v4219_v63 = vld [vmem:[#allocation2 + $0x358] ss:$20 sps:$4 sm:$0xff]  }
  0xb2   :  { %1486 = vmatprep.subr.bf16.mxu0 %v4132_v0  ;;  %1615 = vmatprep.subr.bf16.mxu1 %v4135_v1  ;;  %v4221_v0 = vld [vmem:[#allocation2 + $0x4c0] ss:$20 sps:$4 sm:$0xff]  }
  0xb3   :  { %v4201_v1 = vld [vmem:[#allocation2 + $0x100] ss:$20 sps:$4 sm:$0xff]  }
  0xb5   :  { %1487 = vmatpush1.bf16.msra.mxu0 %v4130_v2  ;;  %1616 = vmatpush1.bf16.msra.mxu1 %v4133_v3  ;;  %v4222_v2 = vld [vmem:[#allocation2 + $0x380] ss:$20 sps:$4 sm:$0xff]   ;;  %v4203_v3 = vld [vmem:[#allocation2 + $0x268] ss:$20 sps:$4 sm:$0xff]  }
  0xb6   :  { %1499 = vmatprep.subr.bf16.mxu0 %v4141_v4  ;;  %1628 = vmatprep.subr.bf16.mxu1 %v4144_v6  ;;  %v4224_v4 = vld [vmem:[#allocation2 + $0x4e8] ss:$20 sps:$4 sm:$0xff]  }
  0xb7   :  { %v4205_v6 = vld [vmem:[#allocation2 + $0x128] ss:$20 sps:$4 sm:$0xff]  }
  0xb8   :  { %1489 = vmatmul.mubr.bf16.vlgmr.msra.gmra.mrb[0].mxu0 %v4609_v5  ;;  %1618 = vmatmul.mubr.bf16.vlgmr.msra.gmra.mrb[0].mxu1 %v4609_v5 }
  0xb9   :  { %1500 = vmatpush1.bf16.msra.mxu0 %v4139_v7  ;;  %1629 = vmatpush1.bf16.msra.mxu1 %v4142_v8  ;;  %v4225_v7 = vld [vmem:[#allocation2 + $0x3a8] ss:$20 sps:$4 sm:$0xff]   ;;  %v4230_v8 = vld [vmem:[#allocation4 + $0x4] ss:$12 sps:$4 sm:$0xff]  }
  0xba   :  { %1501 = vmatprep.subr.bf16.mxu0 %v4147_v9  ;;  %1630 = vmatprep.subr.bf16.mxu1 %v4150_v10  ;;  %v4208_v9 = vld [vmem:[#allocation2 + $0x510] ss:$20 sps:$4 sm:$0xff]   ;;  %v4228_v10 = vld [vmem:[#allocation4] ss:$12 sps:$4 sm:$0xff]  }
  0xbb   :  { %1531 = vmatprep.mubr.bf16.mxu0 %v4500_v16  ;;  %1660 = vmatprep.mubr.bf16.mxu1 %v4500_v16 }
  0xbd   :  { %1502 = vmatpush1.bf16.msra.mxu0 %v4145_v11  ;;  %1631 = vmatpush1.bf16.msra.mxu1 %v4148_v12  ;;  %v4233_v11 = vld [vmem:[#allocation4 + $0x1c] ss:$12 sps:$4 sm:$0xff]   ;;  %v4501_v12 = vmov 0.0  }
  0xbe   :  { %1503 = vmatprep.subr.bf16.mxu0 %v4153_v13  ;;  %1632 = vmatprep.subr.bf16.mxu1 %v4156_v14  ;;  %v4211_v13 = vld [vmem:[#allocation2 + $0x538] ss:$20 sps:$4 sm:$0xff]   ;;  %v4420_v14 = vld [vmem:[%s4739_s0] ss:$20 sps:$4 sm:$0xff]  }
  0xc1   :  { %1504 = vmatpush1.bf16.msra.mxu0 %v4151_v15  ;;  %1633 = vmatpush1.bf16.msra.mxu1 %v4154_v17  ;;  %v4231_v15 = vld [vmem:[#allocation4 + $0x18] ss:$12 sps:$4 sm:$0xff]   ;;  %v4236_v17 = vld [vmem:[#allocation4 + $0x34] ss:$12 sps:$4 sm:$0xff]  }
  0xc2   :  { %1505 = vmatprep.subr.bf16.mxu0 %v4159_v18  ;;  %1634 = vmatprep.subr.bf16.mxu1 %v4162_v19  ;;  %v4214_v18 = vld [vmem:[#allocation2 + $0x560] ss:$20 sps:$4 sm:$0xff]   ;;  %v4234_v19 = vld [vmem:[#allocation4 + $0x30] ss:$12 sps:$4 sm:$0xff]  }
  0xc5   :  { %1506 = vmatpush1.bf16.msra.mxu0 %v4157_v20  ;;  %1635 = vmatpush1.bf16.msra.mxu1 %v4160_v21  ;;  %v4239_v20 = vld [vmem:[#allocation4 + $0x4c] ss:$12 sps:$4 sm:$0xff]   ;;  %v4217_v21 = vld [vmem:[#allocation2 + $0x588] ss:$20 sps:$4 sm:$0xff]  }
  0xc6   :  { %1507 = vmatprep.subr.bf16.mxu0 %v4165_v22  ;;  %1636 = vmatprep.subr.bf16.mxu1 %v4168_v23  ;;  %v4242_v22 = vld [vmem:[#allocation4 + $0x64] ss:$12 sps:$4 sm:$0xff]  }
  0xc7   :  { %v4220_v23 = vld [vmem:[#allocation2 + $0x5b0] ss:$20 sps:$4 sm:$0xff]  }
  0xc9   :  { %1508 = vmatpush1.bf16.msra.mxu0 %v4163_v24  ;;  %1637 = vmatpush1.bf16.msra.mxu1 %v4166_v25  ;;  %v4240_v24 = vld [vmem:[#allocation4 + $0x60] ss:$12 sps:$4 sm:$0xff]   ;;  %v4245_v25 = vld [vmem:[#allocation4 + $0x7c] ss:$12 sps:$4 sm:$0xff]  }
  0xca   :  { %1509 = vmatprep.subr.bf16.mxu0 %v4171_v26  ;;  %1638 = vmatprep.subr.bf16.mxu1 %v4174_v27  ;;  %v4223_v26 = vld [vmem:[#allocation2 + $0x5d8] ss:$20 sps:$4 sm:$0xff]  }
  0xcb   :  { %v4243_v27 = vld [vmem:[#allocation4 + $0x78] ss:$12 sps:$4 sm:$0xff]  }
  0xcd   :  { %1510 = vmatpush1.bf16.msra.mxu0 %v4169_v28  ;;  %1639 = vmatpush1.bf16.msra.mxu1 %v4172_v29  ;;  %v4248_v28 = vld [vmem:[#allocation4 + $0x94] ss:$12 sps:$4 sm:$0xff]  }
  0xce   :  { %1511 = vmatprep.subr.bf16.mxu0 %v4177_v31  ;;  %1640 = vmatprep.subr.bf16.mxu1 %v4180_v32  ;;  %v4226_v29 = vld [vmem:[#allocation2 + $0x600] ss:$20 sps:$4 sm:$0xff]   ;;  %v4246_v31 = vld [vmem:[#allocation4 + $0x90] ss:$12 sps:$4 sm:$0xff]   ;;  %v4251_v32 = vld [vmem:[#allocation4 + $0xac] ss:$12 sps:$4 sm:$0xff]  }
  0xd1   :  { %1512 = vmatpush1.bf16.msra.mxu0 %v4175_v33  ;;  %1641 = vmatpush1.bf16.msra.mxu1 %v4178_v34  ;;  %v4227_v33 = vld [vmem:[#allocation2 + $0x628] ss:$20 sps:$4 sm:$0xff]  }
  0xd2   :  { %1513 = vmatprep.subr.bf16.mxu0 %v4183_v35  ;;  %1642 = vmatprep.subr.bf16.mxu1 %v4186_v36  ;;  %v4249_v34 = vld [vmem:[#allocation4 + $0xa8] ss:$12 sps:$4 sm:$0xff]   ;;  %v4254_v36 = vld [vmem:[#allocation4 + $0xc4] ss:$12 sps:$4 sm:$0xff]  }
  0xd3   :  { %v4255_v35 = vld [vmem:[#allocation4 + $0xc8] ss:$12 sps:$4 sm:$0xff]  }
  0xd5   :  { %1514 = vmatpush1.bf16.msra.mxu0 %v4181_v37  ;;  %1643 = vmatpush1.bf16.msra.mxu1 %v4184_v38  ;;  %v4256_v37 = vld [vmem:[#allocation4 + $0x8] ss:$12 sps:$4 sm:$0xff]   ;;  %v4252_v38 = vld [vmem:[#allocation4 + $0xc0] ss:$12 sps:$4 sm:$0xff]  }
  0xd6   :  { %3667 = vmatprep.subr.bf16.mxu0 %v4188_v39  ;;  %3689 = vmatprep.subr.bf16.mxu1 %v4202_v40  ;;  %v4260_v39 = vld [vmem:[#allocation4 + $0xe0] ss:$12 sps:$4 sm:$0xff]   ;;  %v4259_v40 = vld [vmem:[#allocation4 + $0xdc] ss:$12 sps:$4 sm:$0xff]  }
  0xd8   :  { %1532 = vmatmul.mubr.bf16.vlgmr.msra.gmra.mrb[0].mxu0 %v4618_v41  ;;  %1661 = vmatmul.mubr.bf16.vlgmr.msra.gmra.mrb[0].mxu1 %v4618_v41 }
  0xd9   :  { %3668 = vmatpush3.bf16.msra.mxu0 %v4189_v42  ;;  %3690 = vmatpush3.bf16.msra.mxu1 %v4204_v44  ;;  %v4261_v42 = vld [vmem:[#allocation4 + $0x20] ss:$12 sps:$4 sm:$0xff]   ;;  %v4265_v44 = vld [vmem:[#allocation4 + $0xf8] ss:$12 sps:$4 sm:$0xff]  }
  0xda   :  { %3669 = vmatprep.subr.bf16.mxu0 %v4190_v43  ;;  %3691 = vmatprep.subr.bf16.mxu1 %v4206_v45  ;;  %v4257_v43 = vld [vmem:[#allocation4 + $0xd8] ss:$12 sps:$4 sm:$0xff]   ;;  %v4264_v45 = vld [vmem:[#allocation4 + $0xf4] ss:$12 sps:$4 sm:$0xff]  }
  0xdb   :  { %1703 = vmatprep.mubr.bf16.mxu0 %v4592_v47  ;;  %1744 = vmatprep.mubr.bf16.mxu1 %v4602_v30  ;;  %v4198_v47 = vld [vmem:[#allocation2 + $0x218] ss:$20 sps:$4 sm:$0xff]   ;;  %v4216_v30 = vld [vmem:[#allocation2 + $0x330] ss:$20 sps:$4 sm:$0xff]  }
  0xdd   :  { %3670 = vmatpush3.bf16.msra.mxu0 %v4191_v46  ;;  %3692 = vmatpush3.bf16.msra.mxu1 %v4207_v48  ;;  %v4266_v46 = vld [vmem:[#allocation4 + $0x38] ss:$12 sps:$4 sm:$0xff]   ;;  %v4262_v48 = vld [vmem:[#allocation4 + $0xf0] ss:$12 sps:$4 sm:$0xff]  }
  0xde   :  { %3671 = vmatprep.subr.bf16.mxu0 %v4192_v49  ;;  %3693 = vmatprep.subr.bf16.mxu1 %v4209_v50  ;;  %v4270_v49 = vld [vmem:[#allocation4 + $0x110] ss:$12 sps:$4 sm:$0xff]   ;;  %v4269_v50 = vld [vmem:[#allocation4 + $0x10c] ss:$12 sps:$4 sm:$0xff]  }
  0xe1   :  { %3672 = vmatpush3.bf16.msra.mxu0 %v4193_v51  ;;  %3694 = vmatpush3.bf16.msra.mxu1 %v4210_v53  ;;  %v4271_v51 = vld [vmem:[#allocation4 + $0x50] ss:$12 sps:$4 sm:$0xff]   ;;  %v4275_v53 = vld [vmem:[#allocation4 + $0x128] ss:$12 sps:$4 sm:$0xff]  }
  0xe2   :  { %3673 = vmatprep.subr.bf16.mxu0 %v4194_v52  ;;  %3695 = vmatprep.subr.bf16.mxu1 %v4212_v54  ;;  %v4267_v52 = vld [vmem:[#allocation4 + $0x108] ss:$12 sps:$4 sm:$0xff]  }
  0xe3   :  { %v4276_v54 = vld [vmem:[#allocation4 + $0x68] ss:$12 sps:$4 sm:$0xff]  }
  0xe5   :  { %3674 = vmatpush3.bf16.msra.mxu0 %v4195_v55  ;;  %3696 = vmatpush3.bf16.msra.mxu1 %v4213_v57  ;;  %v4272_v55 = vld [vmem:[#allocation4 + $0x120] ss:$12 sps:$4 sm:$0xff]   ;;  %v4279_v57 = vld [vmem:[#allocation4 + $0x13c] ss:$12 sps:$4 sm:$0xff]  }
  0xe6   :  { %3675 = vmatprep.subr.bf16.mxu0 %v4196_v56  ;;  %3697 = vmatprep.subr.bf16.mxu1 %v4215_v58  ;;  %v4280_v56 = vld [vmem:[#allocation4 + $0x140] ss:$12 sps:$4 sm:$0xff]  }
  0xe7   :  { %v4281_v58 = vld [vmem:[#allocation4 + $0x80] ss:$12 sps:$4 sm:$0xff]  }
  0xe9   :  { %3676 = vmatpush3.bf16.msra.mxu0 %v4197_v59  ;;  %3698 = vmatpush3.bf16.msra.mxu1 %v4216_v30  ;;  %v4277_v59 = vld [vmem:[#allocation4 + $0x138] ss:$12 sps:$4 sm:$0xff]  }
  0xea   :  { %3677 = vmatprep.subr.bf16.mxu0 %v4198_v47  ;;  %3699 = vmatprep.subr.bf16.mxu1 %v4218_v60  ;;  %v4284_v47 = vld [vmem:[#allocation4 + $0x154] ss:$12 sps:$4 sm:$0xff]   ;;  %v4285_v30 = vld [vmem:[#allocation4 + $0x158] ss:$12 sps:$4 sm:$0xff]  }
  0xeb   :  { %v4286_v60 = vld [vmem:[#allocation4 + $0x98] ss:$12 sps:$4 sm:$0xff]  }
  0xed   :  { %3678 = vmatpush3.bf16.msra.mxu0 %v4199_v61  ;;  %3700 = vmatpush3.bf16.msra.mxu1 %v4219_v63  ;;  %v4282_v61 = vld [vmem:[#allocation4 + $0x150] ss:$12 sps:$4 sm:$0xff]  }
  0xee   :  { %3679 = vmatprep.subr.bf16.mxu0 %v4200_v62  ;;  %3701 = vmatprep.subr.bf16.mxu1 %v4221_v0  ;;  %v4289_v62 = vld [vmem:[#allocation4 + $0x16c] ss:$12 sps:$4 sm:$0xff]   ;;  %v4290_v63 = vld [vmem:[#allocation4 + $0x170] ss:$12 sps:$4 sm:$0xff]  }
  0xef   :  { %v4291_v0 = vld [vmem:[#allocation4 + $0xb0] ss:$12 sps:$4 sm:$0xff]  }
  0xf1   :  { %3680 = vmatpush3.bf16.msra.mxu0 %v4201_v1  ;;  %3702 = vmatpush3.bf16.msra.mxu1 %v4222_v2  ;;  %v4287_v1 = vld [vmem:[#allocation4 + $0x168] ss:$12 sps:$4 sm:$0xff]   ;;  %v4294_v2 = vld [vmem:[#allocation4 + $0x184] ss:$12 sps:$4 sm:$0xff]  }
  0xf2   :  { %3681 = vmatprep.subr.bf16.mxu0 %v4203_v3  ;;  %3703 = vmatprep.subr.bf16.mxu1 %v4224_v4  ;;  %v4295_v3 = vld [vmem:[#allocation4 + $0x248] ss:$12 sps:$4 sm:$0xff]   ;;  %v322_v4 = vlaneseq }
  0xf5   :  { %3682 = vmatpush3.bf16.msra.mxu0 %v4205_v6  ;;  %3704 = vmatpush3.bf16.msra.mxu1 %v4225_v7  ;;  %v4639_v6 = vshrl.u32 %v322_v4, 7  ;;  %v4324_v4 = vld [vmem:[#allocation4 + $0x214] ss:$12 sps:$4 sm:$0xff]  }
  0xf6   :  { %3813 = vmatprep.subr.bf16.mxu0 %v4501_v12  ;;  %2626 = vmatprep.subr.bf16.mxu1 %v4230_v8 }
  0xf7   :  { %v324_v7 = vsub.s32 0, %v4639_v6  ;;  %v332_v8 = vsub.s32 2, %v4639_v6 }
  0xf8   :  { %1704 = vmatmul.mubr.bf16.vlgmr.msra.gmra.mrb[4].mxu0 %v4420_v14  ;;  %1745 = vmatmul.mubr.bf16.vlgmr.msra.gmra.mrb[4].mxu1 %v4609_v5  ;;  %v4237_v5 = vld [vmem:[#allocation4 + $0x48] ss:$12 sps:$4 sm:$0xff]  }
  0xf9   :  { %3814 = vmatpush3.bf16.msra.mxu0 %v4208_v9  ;;  %3829 = vmatprep.mubr.msk.bf16.mxu0 %vm4502_vm0, %v4501_v12  ;;  %v4646_v9 = vld [vmem:[%s4741_s2] sm:$0x1f] }
  0xfa   :  { %3815 = vmatprep.subr.bf16.mxu0 %v4501_v12  ;;  %2627 = vmatpush1.bf16.msra.mxu1 %v4228_v10  ;;  %v328_v10 = vsub.s32 1, %v4639_v6  ;;  %v333_v14 = vrot.slane %v4646_v9, %v332_v8 }
  0xfb   :  { %2628 = vmatprep.subr.bf16.mxu1 %v4233_v11  ;;  %v336_v11 = vsub.s32 3, %v4639_v6 }
  0xfd   :  { %3816 = vmatpush3.bf16.msra.mxu0 %v4211_v13  ;;  %v325_v13 = vrot.slane %v4646_v9, %v324_v7 }
  0xfe   :  { %3817 = vmatprep.subr.bf16.mxu0 %v4501_v12  ;;  %2629 = vmatpush1.bf16.msra.mxu1 %v4231_v15  ;;  %v329_v15 = vrot.slane %v4646_v9, %v328_v10 }
  0xff   :  { %2630 = vmatprep.subr.bf16.mxu1 %v4236_v17  ;;  %v337_v17 = vrot.slane %v4646_v9, %v336_v11  ;;  %v4325_v11 = vld [vmem:[#allocation4 + $0x2d8] ss:$12 sps:$4 sm:$0xff]  }
 0x101   :  { %3818 = vmatpush3.bf16.msra.mxu0 %v4214_v18 }
 0x102   :  { %3819 = vmatprep.subr.bf16.mxu0 %v4501_v12  ;;  %2631 = vmatpush1.bf16.msra.mxu1 %v4234_v19 }
 0x103   :  { %2632 = vmatprep.subr.bf16.mxu1 %v4239_v20 }
 0x105   :  { %3820 = vmatpush3.bf16.msra.mxu0 %v4217_v21 }
 0x106   :  { %3821 = vmatprep.subr.bf16.mxu0 %v4501_v12  ;;  %2633 = vmatpush1.bf16.msra.mxu1 %v4237_v5 }
 0x107   :  { %2634 = vmatprep.subr.bf16.mxu1 %v4242_v22 }
 0x109   :  { %3822 = vmatpush3.bf16.msra.mxu0 %v4220_v23 }
 0x10a   :  { %3823 = vmatprep.subr.bf16.mxu0 %v4501_v12  ;;  %2635 = vmatpush1.bf16.msra.mxu1 %v4240_v24 }
 0x10b   :  { %2636 = vmatprep.subr.bf16.mxu1 %v4245_v25 }
 0x10d   :  { %3824 = vmatpush3.bf16.msra.mxu0 %v4223_v26 }
 0x10e   :  { %3825 = vmatprep.subr.bf16.mxu0 %v4501_v12  ;;  %2637 = vmatpush1.bf16.msra.mxu1 %v4243_v27 }
 0x10f   :  { %2638 = vmatprep.subr.bf16.mxu1 %v4248_v28 }
 0x111   :  { %3826 = vmatpush3.bf16.msra.mxu0 %v4226_v29 }
 0x112   :  { %3827 = vmatprep.subr.bf16.mxu0 %v4501_v12  ;;  %2639 = vmatpush1.bf16.msra.mxu1 %v4246_v31 }
 0x113   :  { %2640 = vmatprep.subr.bf16.mxu1 %v4251_v32 }
 0x115   :  { %3828 = vmatpush3.bf16.msra.mxu0 %v4227_v33 }
 0x116   :  { %2641 = vmatpush1.bf16.msra.mxu1 %v4249_v34  ;;  %3720 = vmatprep.subr.bf16.mxu0 %v4255_v35 }
 0x117   :  { %2642 = vmatprep.subr.bf16.mxu1 %v4254_v36 }
 0x118   :  { %3830 = vmatmul.mubr.bf16.vlgmr.msra.gmra.mrb[8].mxu0 %v4618_v41  ;;  %v4274_v41 = vld [vmem:[#allocation4 + $0x124] ss:$12 sps:$4 sm:$0xff]  }
 0x119   :  { %3721 = vmatpush3.bf16.msra.mxu0 %v4256_v37 }
 0x11a   :  { %2643 = vmatpush1.bf16.msra.mxu1 %v4252_v38  ;;  %3722 = vmatprep.subr.bf16.mxu0 %v4260_v39 }
 0x11b   :  { %2644 = vmatprep.subr.bf16.mxu1 %v4259_v40 }
 0x11d   :  { %3723 = vmatpush3.bf16.msra.mxu0 %v4261_v42 }
 0x11e   :  { %2645 = vmatpush1.bf16.msra.mxu1 %v4257_v43  ;;  %3724 = vmatprep.subr.bf16.mxu0 %v4265_v44 }
 0x11f   :  { %2646 = vmatprep.subr.bf16.mxu1 %v4264_v45 }
 0x121   :  { %3725 = vmatpush3.bf16.msra.mxu0 %v4266_v46 }
 0x122   :  { %2647 = vmatpush1.bf16.msra.mxu1 %v4262_v48  ;;  %3726 = vmatprep.subr.bf16.mxu0 %v4270_v49  ;;  %v4292_v48 = vld [vmem:[#allocation4 + $0x180] ss:$12 sps:$4 sm:$0xff]   ;;  %v4296_v49 = vld [vmem:[#allocation4 + $0x188] ss:$12 sps:$4 sm:$0xff]  }
 0x123   :  { %2648 = vmatprep.subr.bf16.mxu1 %v4269_v50  ;;  %v4299_v50 = vld [vmem:[#allocation4 + $0x19c] ss:$12 sps:$4 sm:$0xff]  }
 0x125   :  { %3727 = vmatpush3.bf16.msra.mxu0 %v4271_v51  ;;  %v4300_v51 = vld [vmem:[#allocation4 + $0x260] ss:$12 sps:$4 sm:$0xff]  }
 0x126   :  { %2649 = vmatpush1.bf16.msra.mxu1 %v4267_v52  ;;  %3728 = vmatprep.subr.bf16.mxu0 %v4275_v53  ;;  %v4297_v52 = vld [vmem:[#allocation4 + $0x198] ss:$12 sps:$4 sm:$0xff]   ;;  %v4301_v53 = vld [vmem:[#allocation4 + $0x1a0] ss:$12 sps:$4 sm:$0xff]  }
 0x127   :  { %2650 = vmatprep.subr.bf16.mxu1 %v4274_v41  ;;  %v4304_v41 = vld [vmem:[#allocation4 + $0x1b4] ss:$12 sps:$4 sm:$0xff]  }
 0x129   :  { %3729 = vmatpush3.bf16.msra.mxu0 %v4276_v54  ;;  %v4305_v54 = vld [vmem:[#allocation4 + $0x278] ss:$12 sps:$4 sm:$0xff]  }
 0x12a   :  { %2651 = vmatpush1.bf16.msra.mxu1 %v4272_v55  ;;  %3730 = vmatprep.subr.bf16.mxu0 %v4280_v56  ;;  %v4302_v55 = vld [vmem:[#allocation4 + $0x1b0] ss:$12 sps:$4 sm:$0xff]   ;;  %v4306_v56 = vld [vmem:[#allocation4 + $0x1b8] ss:$12 sps:$4 sm:$0xff]  }
 0x12b   :  { %2652 = vmatprep.subr.bf16.mxu1 %v4279_v57  ;;  %v4309_v57 = vld [vmem:[#allocation4 + $0x1cc] ss:$12 sps:$4 sm:$0xff]  }
 0x12d   :  { %3731 = vmatpush3.bf16.msra.mxu0 %v4281_v58  ;;  %v4310_v58 = vld [vmem:[#allocation4 + $0x290] ss:$12 sps:$4 sm:$0xff]  }
 0x12e   :  { %2653 = vmatpush1.bf16.msra.mxu1 %v4277_v59  ;;  %3732 = vmatprep.subr.bf16.mxu0 %v4285_v30  ;;  %v4307_v59 = vld [vmem:[#allocation4 + $0x1c8] ss:$12 sps:$4 sm:$0xff]   ;;  %v4314_v30 = vld [vmem:[#allocation4 + $0x1e4] ss:$12 sps:$4 sm:$0xff]  }
 0x12f   :  { %2654 = vmatprep.subr.bf16.mxu1 %v4284_v47  ;;  %v4311_v47 = vld [vmem:[#allocation4 + $0x1d0] ss:$12 sps:$4 sm:$0xff]  }
 0x131   :  { %3733 = vmatpush3.bf16.msra.mxu0 %v4286_v60  ;;  %v4315_v60 = vld [vmem:[#allocation4 + $0x2a8] ss:$12 sps:$4 sm:$0xff]  }
 0x132   :  { %2655 = vmatpush1.bf16.msra.mxu1 %v4282_v61  ;;  %3734 = vmatprep.subr.bf16.mxu0 %v4290_v63  ;;  %v4312_v61 = vld [vmem:[#allocation4 + $0x1e0] ss:$12 sps:$4 sm:$0xff]   ;;  %v4319_v63 = vld [vmem:[#allocation4 + $0x1fc] ss:$12 sps:$4 sm:$0xff]  }
 0x133   :  { %2656 = vmatprep.subr.bf16.mxu1 %v4289_v62  ;;  %v4316_v62 = vld [vmem:[#allocation4 + $0x1e8] ss:$12 sps:$4 sm:$0xff]  }
 0x135   :  { %3735 = vmatpush3.bf16.msra.mxu0 %v4291_v0  ;;  %v4320_v0 = vld [vmem:[#allocation4 + $0x2c0] ss:$12 sps:$4 sm:$0xff]  }
 0x136   :  { %2657 = vmatpush1.bf16.msra.mxu1 %v4287_v1  ;;  %3742 = vmatprep.subr.bf16.mxu0 %v4295_v3  ;;  %v4317_v1 = vld [vmem:[#allocation4 + $0x1f8] ss:$12 sps:$4 sm:$0xff]   ;;  %v340_v3 = vsub.s32 4, %v4639_v6  ;;  %v4405_v6 = vld [vmem:[#allocation6 + $0x88] sm:$0xff]  }
 0x137   :  { %2669 = vmatprep.subr.bf16.mxu1 %v4294_v2  ;;  %v4321_v2 = vld [vmem:[#allocation4 + $0x200] ss:$12 sps:$4 sm:$0xff]  }
 0x1ab   :  { %v1533_v18 = vpop.f32.mrb[0].mxu0  ;;  %v1662_v19 = vpop.f32.mrb[0].mxu1 }
 0x1ac   :  { %v3893_v20 = vadd.f32 %v1533_v18, %v325_v13  ;;  %v3897_v21 = vadd.f32 %v1662_v19, %v333_v14  ;;  %v1535_v5 = vpop.f32.mrb[1].mxu0  ;;  %v1664_v22 = vpop.f32.mrb[1].mxu1  ;;  %v4329_v19 = vld [vmem:[#allocation4 + $0x22c] ss:$12 sps:$4 sm:$0xff]  }
 0x1ad   :  { %v3894_v23 = vadd.f32 %v1535_v5, %v329_v15  ;;  %v3898_v24 = vadd.f32 %v1664_v22, %v337_v17  ;;  %v1537_v25 = vpop.f32.mrb[2].mxu0  ;;  %v1666_v26 = vpop.f32.mrb[2].mxu1 }
 0x1ae   :  { %v3895_v27 = vadd.f32 %v1537_v25, %v325_v13  ;;  %v3899_v28 = vadd.f32 %v1666_v26, %v333_v14  ;;  %v1539_v29 = vpop.f32.mrb[3].mxu0  ;;  %v1668_v31 = vpop.f32.mrb[3].mxu1  ;;  %v1794_v34 = vmax.f32 %v3893_v20, 0.0  ;;  %v1796_v35 = vmax.f32 %v3897_v21, 0.0  ;;  %v4322_v13 = vld [vmem:[#allocation4 + $0x210] ss:$12 sps:$4 sm:$0xff]  }
 0x1af   :  { %v3896_v32 = vadd.f32 %v1539_v29, %v329_v15  ;;  %v3900_v33 = vadd.f32 %v1668_v31, %v337_v17  ;;  %v1795_v38 = vmax.f32 %v3894_v23, 0.0  ;;  %v1797_v39 = vmax.f32 %v3898_v24, 0.0  ;;  %v4326_v14 = vld [vmem:[#allocation4 + $0x218] ss:$12 sps:$4 sm:$0xff]   ;;  %v4330_v20 = vld [vmem:[#allocation4 + $0x2f0] ss:$12 sps:$4 sm:$0xff]  }
 0x1b0   :  { %v1799_v36 = vmax.f32 %v3895_v27, 0.0  ;;  %v1801_v37 = vmax.f32 %v3899_v28, 0.0  ;;  %v341_v17 = vrot.slane %v4646_v9, %v340_v3  ;;  %v4327_v28 = vld [vmem:[#allocation4 + $0x228] ss:$12 sps:$4 sm:$0xff]   ;;  %v4331_v29 = vld [vmem:[#allocation4 + $0x230] ss:$12 sps:$4 sm:$0xff]  }
 0x1b1   :  { %v1800_v40 = vmax.f32 %v3896_v32, 0.0  ;;  %v1802_v42 = vmax.f32 %v3900_v33, 0.0  ;;  %v4334_v33 = vld [vmem:[#allocation4 + $0x244] ss:$12 sps:$4 sm:$0xff]  }
 0x1b2   :  { %v1804_v43 = vpack.c.bf16 %v1799_v36, %v1794_v34  ;;  %v4660_v44 = vpack.c.bf16 %v1801_v37, %v1796_v35  ;;  %v4332_v36 = vld [vmem:[#allocation4 + $0x240] ss:$12 sps:$4 sm:$0xff]   ;;  %v4335_v37 = vld [vmem:[#allocation4 + $0x308] ss:$12 sps:$4 sm:$0xff]  }
 0x1b3   :  { %v1805_v45 = vpack.c.bf16 %v1800_v40, %v1795_v38  ;;  %v1807_v46 = vpack.c.bf16 %v1802_v42, %v1797_v39  ;;  %v4338_v39 = vld [vmem:[#allocation4 + $0x25c] ss:$12 sps:$4 sm:$0xff]   ;;  %v4336_v40 = vld [vmem:[#allocation4 + $0x258] ss:$12 sps:$4 sm:$0xff]   ;;  %v4339_v42 = vld [vmem:[#allocation4 + $0x320] ss:$12 sps:$4 sm:$0xff]  }
 0x1b5   :  { %2658 = vmatprep.mubr.bf16.mxu1 %v1805_v45  ;;  %2787 = vmatprep.mubr.bf16.mxu0 %v1805_v45  ;;  %v4340_v45 = vld [vmem:[#allocation4 + $0x270] ss:$12 sps:$4 sm:$0xff]  }
 0x1b6   :  { %2659 = vmatmul.mubr.bf16.vlgmr.msra.gmra.mrb[8].mxu1 %v1804_v43  ;;  %2788 = vmatmul.mubr.bf16.vlgmr.msra.gmra.mrb[12].mxu0 %v1804_v43  ;;  %v4342_v43 = vld [vmem:[#allocation4 + $0x274] ss:$12 sps:$4 sm:$0xff]  }
 0x1b7   :  { %2670 = vmatpush1.bf16.msra.mxu1 %v4292_v48  ;;  %3743 = vmatpush3.bf16.msra.mxu0 %v4296_v49  ;;  %v4346_v48 = vld [vmem:[#allocation4 + $0x28c] ss:$12 sps:$4 sm:$0xff]   ;;  %v4344_v49 = vld [vmem:[#allocation4 + $0x288] ss:$12 sps:$4 sm:$0xff]  }
 0x1b8   :  { %2701 = vmatprep.mubr.bf16.mxu1 %v1807_v46  ;;  %2828 = vmatprep.mubr.bf16.mxu0 %v1807_v46  ;;  %v4343_v46 = vld [vmem:[#allocation4 + $0x338] ss:$12 sps:$4 sm:$0xff]  }
 0x1b9   :  { %2671 = vmatprep.subr.bf16.mxu1 %v4299_v50  ;;  %3744 = vmatprep.subr.bf16.mxu0 %v4300_v51  ;;  %v4347_v50 = vld [vmem:[#allocation4 + $0x350] ss:$12 sps:$4 sm:$0xff]  }
 0x1ba   :  { %v4350_v51 = vld [vmem:[#allocation4 + $0x2a4] ss:$12 sps:$4 sm:$0xff]  }
 0x1bb   :  { %2672 = vmatpush1.bf16.msra.mxu1 %v4297_v52  ;;  %3745 = vmatpush3.bf16.msra.mxu0 %v4301_v53  ;;  %v4348_v52 = vld [vmem:[#allocation4 + $0x2a0] ss:$12 sps:$4 sm:$0xff]   ;;  %v4351_v53 = vld [vmem:[#allocation4 + $0x368] ss:$12 sps:$4 sm:$0xff]  }
 0x1bc   :  { %2673 = vmatprep.subr.bf16.mxu1 %v4304_v41  ;;  %3746 = vmatprep.subr.bf16.mxu0 %v4305_v54  ;;  %v4354_v41 = vld [vmem:[#allocation4 + $0x2bc] ss:$12 sps:$4 sm:$0xff]   ;;  %v4352_v54 = vld [vmem:[#allocation4 + $0x2b8] ss:$12 sps:$4 sm:$0xff]  }
 0x1bf   :  { %2674 = vmatpush1.bf16.msra.mxu1 %v4302_v55  ;;  %3747 = vmatpush3.bf16.msra.mxu0 %v4306_v56  ;;  %v4355_v55 = vld [vmem:[#allocation4 + $0x380] ss:$12 sps:$4 sm:$0xff]  }
 0x1c0   :  { %2675 = vmatprep.subr.bf16.mxu1 %v4309_v57  ;;  %3748 = vmatprep.subr.bf16.mxu0 %v4310_v58  ;;  %v4358_v56 = vld [vmem:[#allocation4 + $0x2d4] ss:$12 sps:$4 sm:$0xff]   ;;  %v4356_v58 = vld [vmem:[#allocation4 + $0x2d0] ss:$12 sps:$4 sm:$0xff]  }
 0x1c3   :  { %2676 = vmatpush1.bf16.msra.mxu1 %v4307_v59  ;;  %3749 = vmatpush3.bf16.msra.mxu0 %v4311_v47  ;;  %v4359_v59 = vld [vmem:[#allocation4 + $0x398] ss:$12 sps:$4 sm:$0xff]  }
 0x1c4   :  { %2677 = vmatprep.subr.bf16.mxu1 %v4314_v30  ;;  %3750 = vmatprep.subr.bf16.mxu0 %v4315_v60  ;;  %v4362_v60 = vld [vmem:[#allocation4 + $0x2ec] ss:$12 sps:$4 sm:$0xff]  }
 0x1c7   :  { %2678 = vmatpush1.bf16.msra.mxu1 %v4312_v61  ;;  %3751 = vmatpush3.bf16.msra.mxu0 %v4316_v62 }
 0x1c8   :  { %2679 = vmatprep.subr.bf16.mxu1 %v4319_v63  ;;  %3752 = vmatprep.subr.bf16.mxu0 %v4320_v0 }
 0x1cb   :  { %2680 = vmatpush1.bf16.msra.mxu1 %v4317_v1  ;;  %3753 = vmatpush3.bf16.msra.mxu0 %v4321_v2  ;;  %v3683_v15 = vpop.f32.mrb[4].mxu0  ;;  %v3705_v18 = vpop.f32.mrb[4].mxu1  ;;  %v4360_v1 = vld [vmem:[#allocation4 + $0x2e8] ss:$12 sps:$4 sm:$0xff]   ;;  %v4363_v2 = vld [vmem:[#allocation4 + $0x3b0] ss:$12 sps:$4 sm:$0xff]  }
 0x1cc   :  { %2681 = vmatprep.subr.bf16.mxu1 %v4324_v4  ;;  %3754 = vmatprep.subr.bf16.mxu0 %v4325_v11  ;;  %v3684_v21 = vpop.f32.mrb[5].mxu0  ;;  %v3706_v5 = vpop.f32.mrb[5].mxu1  ;;  %v4366_v4 = vld [vmem:[#allocation4 + $0x304] ss:$12 sps:$4 sm:$0xff]  }
 0x1cd   :  { %v3685_v22 = vadd.f32 %v3684_v21, %v3683_v15  ;;  %v3686_v23 = vpop.f32.mrb[6].mxu0  ;;  %v3707_v24 = vadd.f32 %v3706_v5, %v3705_v18  ;;  %v3708_v25 = vpop.f32.mrb[6].mxu1  ;;  %v4367_v15 = vld [vmem:[#allocation4 + $0x318] ss:$12 sps:$4 sm:$0xff]   ;;  %v4370_v18 = vld [vmem:[#allocation4 + $0x330] ss:$12 sps:$4 sm:$0xff]  }
 0x1ce   :  { %v3687_v26 = vpop.f32.mrb[7].mxu0  ;;  %v3709_v27 = vpop.f32.mrb[7].mxu1  ;;  %v4378_v21 = vld [vmem:[#allocation4 + $0x364] ss:$12 sps:$4 sm:$0xff]   ;;  %v4376_v5 = vld [vmem:[#allocation4 + $0x360] ss:$12 sps:$4 sm:$0xff]  }
 0x1cf   :  { %2682 = vmatpush1.bf16.msra.mxu1 %v4322_v13  ;;  %3755 = vmatpush3.bf16.msra.mxu0 %v4326_v14  ;;  %v1706_v31 = vadd.f32 %v3685_v22, %v341_v17  ;;  %v3688_v32 = vadd.f32 %v3687_v26, %v3686_v23  ;;  %v3710_v9 = vadd.f32 %v3709_v27, %v3708_v25  ;;  %v4364_v13 = vld [vmem:[#allocation4 + $0x300] ss:$12 sps:$4 sm:$0xff]   ;;  %v4369_v14 = vld [vmem:[#allocation4 + $0x31c] ss:$12 sps:$4 sm:$0xff]  }
 0x1d0   :  { %2683 = vmatprep.subr.bf16.mxu1 %v4329_v19  ;;  %3756 = vmatprep.subr.bf16.mxu0 %v4330_v20  ;;  %v4375_v19 = vld [vmem:[#allocation4 + $0x34c] ss:$12 sps:$4 sm:$0xff]   ;;  %v4373_v20 = vld [vmem:[#allocation4 + $0x348] ss:$12 sps:$4 sm:$0xff]   ;;  %v4388_v26 = vld [vmem:[#allocation6 + $0x40] sm:$0xff]  }
 0x1d1   :  { %v1709_v34 = vadd.f32 %v3688_v32, %v341_v17  ;;  %v1747_v35 = vadd.f32 %v3707_v24, %v1706_v31  ;;  %v4372_v17 = vld [vmem:[#allocation4 + $0x334] ss:$12 sps:$4 sm:$0xff]   ;;  %v4381_v22 = vld [vmem:[#allocation4 + $0x37c] ss:$12 sps:$4 sm:$0xff]   ;;  %v4387_v24 = vld [vmem:[#allocation4 + $0x3ac] ss:$12 sps:$4 sm:$0xff]  }
 0x1d2   :  { %v4384_v23 = vld [vmem:[#allocation4 + $0x394] ss:$12 sps:$4 sm:$0xff]  }
 0x1d3   :  { %2684 = vmatpush1.bf16.msra.mxu1 %v4327_v28  ;;  %3757 = vmatpush3.bf16.msra.mxu0 %v4331_v29  ;;  %v1750_v38 = vadd.f32 %v3710_v9, %v1709_v34  ;;  %v4385_v25 = vld [vmem:[#allocation4 + $0x3a8] ss:$12 sps:$4 sm:$0xff]   ;;  %v4389_v27 = vld [vmem:[#allocation6] sm:$0xff]   ;;  %v4394_v9 = vld [vmem:[#allocation6 + $0x58] sm:$0xff]  }
 0x1d4   :  { %2685 = vmatprep.subr.bf16.mxu1 %v4334_v33  ;;  %3833 = vmatprep.subr.bf16.mxu0 %v4501_v12  ;;  %v4390_v28 = vld [vmem:[#allocation6 + $0x48] sm:$0xff]   ;;  %v4392_v31 = vld [vmem:[#allocation6 + $0x50] sm:$0xff]   ;;  %v4395_v33 = vld [vmem:[#allocation6 + $0x18] sm:$0xff]  }
 0x1d5   :  { %v4391_v29 = vld [vmem:[#allocation6 + $0x8] sm:$0xff]   ;;  %v4393_v32 = vld [vmem:[#allocation6 + $0x10] sm:$0xff]   ;;  %v4396_v34 = vld [vmem:[#allocation6 + $0x60] sm:$0xff]  }
 0x1d6   :  { %2829 = vmatmul.mubr.bf16.vlgmr.msra.gmra.mrb[16].mxu0 %v4660_v44 }
 0x1d7   :  { %2686 = vmatpush1.bf16.msra.mxu1 %v4332_v36  ;;  %3834 = vmatpush3.bf16.msra.mxu0 %v4335_v37  ;;  %v4398_v36 = vld [vmem:[#allocation6 + $0x68] sm:$0xff]  }
 0x1d8   :  { %2687 = vmatprep.subr.bf16.mxu1 %v4338_v39  ;;  %3835 = vmatprep.subr.bf16.mxu0 %v4501_v12  ;;  %v4399_v37 = vld [vmem:[#allocation6 + $0x28] sm:$0xff]   ;;  %v4401_v39 = vld [vmem:[#allocation6 + $0x30] sm:$0xff]  }
 0x1d9   :  { %3849 = vmatprep.mubr.msk.bf16.mxu0 %vm4502_vm0, %v4501_v12 }
 0x1db   :  { %2688 = vmatpush1.bf16.msra.mxu1 %v4336_v40  ;;  %3836 = vmatpush3.bf16.msra.mxu0 %v4339_v42  ;;  %v4402_v40 = vld [vmem:[#allocation6 + $0x78] sm:$0xff]  }
 0x1dc   :  { %2689 = vmatprep.subr.bf16.mxu1 %v4342_v43  ;;  %3837 = vmatprep.subr.bf16.mxu0 %v4501_v12  ;;  %v4403_v42 = vld [vmem:[#allocation6 + $0x38] sm:$0xff]  }
 0x1df   :  { %2690 = vmatpush1.bf16.msra.mxu1 %v4340_v45  ;;  %3838 = vmatpush3.bf16.msra.mxu0 %v4343_v46 }
 0x1e0   :  { %2691 = vmatprep.subr.bf16.mxu1 %v4346_v48  ;;  %3839 = vmatprep.subr.bf16.mxu0 %v4501_v12 }
 0x1e3   :  { %2692 = vmatpush1.bf16.msra.mxu1 %v4344_v49  ;;  %3840 = vmatpush3.bf16.msra.mxu0 %v4347_v50 }
 0x1e4   :  { %2693 = vmatprep.subr.bf16.mxu1 %v4350_v51  ;;  %3841 = vmatprep.subr.bf16.mxu0 %v4501_v12  ;;  %v1969_v51 = vld [vmem:[%s4743_s4] sm:$0x7] }
 0x1e7   :  { %2694 = vmatpush1.bf16.msra.mxu1 %v4348_v52  ;;  %3842 = vmatpush3.bf16.msra.mxu0 %v4351_v53  ;;  %v1982_v52 = vrot.slane %v1969_v51, %v332_v8  ;;  %v1974_v8 = vrot.slane %v1969_v51, %v324_v7  ;;  %v4406_v7 = vld [vmem:[#allocation6 + $0x90] sm:$0xff]  }
 0x1e8   :  { %2695 = vmatprep.subr.bf16.mxu1 %v4354_v41  ;;  %3843 = vmatprep.subr.bf16.mxu0 %v4501_v12 }
 0x1eb   :  { %2696 = vmatpush1.bf16.msra.mxu1 %v4352_v54  ;;  %3844 = vmatpush3.bf16.msra.mxu0 %v4355_v55  ;;  %v1787_v57 = vpop.f32.mrb[8].mxu0 }
 0x1ec   :  { %v1788_v47 = vadd.f32 %v1787_v57, %v1747_v35  ;;  %v3831_v30 = vpop.f32.mrb[9].mxu0  ;;  %2697 = vmatprep.subr.bf16.mxu1 %v4358_v56  ;;  %3845 = vmatprep.subr.bf16.mxu0 %v4501_v12  ;;  %v4397_v35 = vld [vmem:[#allocation6 + $0x20] sm:$0xff]  }
 0x1ed   :  { %v1790_v61 = vpop.f32.mrb[10].mxu0 }
 0x1ee   :  { %v1798_v62 = vmax.f32 %v1788_v47, 0.0  ;;  %v1791_v63 = vadd.f32 %v1790_v61, %v1750_v38  ;;  %v3832_v0 = vpop.f32.mrb[11].mxu0  ;;  %v4400_v38 = vld [vmem:[#allocation6 + $0x70] sm:$0xff]  }
 0x1ef   :  { %2698 = vmatpush1.bf16.msra.mxu1 %v4356_v58  ;;  %3846 = vmatpush3.bf16.msra.mxu0 %v4359_v59 }
 0x1f0   :  { %v1803_v3 = vmax.f32 %v1791_v63, 0.0  ;;  %2699 = vmatprep.subr.bf16.mxu1 %v4362_v60  ;;  %3847 = vmatprep.subr.bf16.mxu0 %v4501_v12 }
 0x1f2   :  { %v1808_v11 = vpack.c.bf16 %v1803_v3, %v1798_v62 }
 0x1f3   :  { %2700 = vmatpush1.bf16.msra.mxu1 %v4360_v1  ;;  %3848 = vmatpush3.bf16.msra.mxu0 %v4363_v2 }
 0x1f4   :  { %2712 = vmatprep.subr.bf16.mxu1 %v4366_v4  ;;  %3773 = vmatprep.subr.bf16.mxu0 %v4388_v26  ;;  %v4408_v26 = vld [vmem:[#allocation6 + $0xa0] sm:$0xff]  }
 0x1f6   :  { %2702 = vmatmul.mubr.bf16.vlgmr.msra.gmra.mrb[8].mxu1 %v4660_v44  ;;  %3850 = vmatmul.mubr.bf16.vlgmr.msra.gmra.mrb[20].mxu0 %v1808_v11  ;;  %v4379_v44 = vld [vmem:[#allocation4 + $0x378] ss:$12 sps:$4 sm:$0xff]  }
 0x1f7   :  { %2713 = vmatpush1.bf16.msra.mxu1 %v4364_v13  ;;  %2744 = vmatprep.mubr.bf16.mxu1 %v4500_v16  ;;  %v4382_v16 = vld [vmem:[#allocation4 + $0x390] ss:$12 sps:$4 sm:$0xff]  }
 0x1f8   :  { %2714 = vmatprep.subr.bf16.mxu1 %v4369_v14  ;;  %3774 = vmatpush3.bf16.msra.mxu0 %v4389_v27  ;;  %v4409_v27 = vld [vmem:[#allocation6 + $0xa8] sm:$0xff]  }
 0x1f9   :  { %3775 = vmatprep.subr.bf16.mxu0 %v4390_v28  ;;  %v4410_v28 = vld [vmem:[#allocation6 + $0xb0] sm:$0xff]  }
 0x1fb   :  { %2715 = vmatpush1.bf16.msra.mxu1 %v4367_v15 }
 0x1fc   :  { %2716 = vmatprep.subr.bf16.mxu1 %v4372_v17  ;;  %3776 = vmatpush3.bf16.msra.mxu0 %v4391_v29  ;;  %v4411_v29 = vld [vmem:[#allocation6 + $0xb8] sm:$0xff]  }
 0x1fd   :  { %3777 = vmatprep.subr.bf16.mxu0 %v4392_v31  ;;  %v4412_v31 = vld [vmem:[%s4746_s7] sm:$0xff]  }
 0x1ff   :  { %2717 = vmatpush1.bf16.msra.mxu1 %v4370_v18 }
 0x200   :  { %2718 = vmatprep.subr.bf16.mxu1 %v4375_v19  ;;  %3778 = vmatpush3.bf16.msra.mxu0 %v4393_v32  ;;  %v4413_v32 = vld [vmem:[%s4746_s7 + $0x8] sm:$0xff]  }
 0x201   :  { %3779 = vmatprep.subr.bf16.mxu0 %v4394_v9  ;;  %v4414_v9 = vld [vmem:[%s4746_s7 + $0x10] sm:$0xff]  }
 0x203   :  { %2719 = vmatpush1.bf16.msra.mxu1 %v4373_v20 }
 0x204   :  { %2720 = vmatprep.subr.bf16.mxu1 %v4378_v21  ;;  %3780 = vmatpush3.bf16.msra.mxu0 %v4395_v33  ;;  %v4415_v33 = vld [vmem:[%s4746_s7 + $0x18] sm:$0xff]  }
 0x205   :  { %3781 = vmatprep.subr.bf16.mxu0 %v4396_v34  ;;  %v4416_v34 = vld [vmem:[%s4746_s7 + $0x20] sm:$0xff]  }
 0x207   :  { %2721 = vmatpush1.bf16.msra.mxu1 %v4376_v5 }
 0x208   :  { %2722 = vmatprep.subr.bf16.mxu1 %v4381_v22  ;;  %3782 = vmatpush3.bf16.msra.mxu0 %v4397_v35  ;;  %v4417_v35 = vld [vmem:[%s4746_s7 + $0x28] sm:$0xff]  }
 0x209   :  { %3783 = vmatprep.subr.bf16.mxu0 %v4398_v36  ;;  %v4418_v36 = vld [vmem:[%s4746_s7 + $0x30] sm:$0xff]  }
 0x20b   :  { %2723 = vmatpush1.bf16.msra.mxu1 %v4379_v44 }
 0x20c   :  { %2724 = vmatprep.subr.bf16.mxu1 %v4384_v23  ;;  %3784 = vmatpush3.bf16.msra.mxu0 %v4399_v37  ;;  %v4419_v37 = vld [vmem:[%s4746_s7 + $0x38] sm:$0xff]  }
 0x20d   :  { %3785 = vmatprep.subr.bf16.mxu0 %v4400_v38 }
 0x20f   :  { %2725 = vmatpush1.bf16.msra.mxu1 %v4382_v16 }
 0x210   :  { %2726 = vmatprep.subr.bf16.mxu1 %v4387_v24  ;;  %3786 = vmatpush3.bf16.msra.mxu0 %v4401_v39 }
 0x211   :  { %3787 = vmatprep.subr.bf16.mxu0 %v4402_v40 }
 0x213   :  { %2727 = vmatpush1.bf16.msra.mxu1 %v4385_v25  ;;  %v4404_v25 = vld [vmem:[#allocation6 + $0x80] sm:$0xff]  }
 0x214   :  { %3873 = vmatprep.subr.bf16.mxu1 %v4501_v12  ;;  %3788 = vmatpush3.bf16.msra.mxu0 %v4403_v42 }
 0x215   :  { %3853 = vmatprep.subr.bf16.mxu0 %v4501_v12 }
 0x216   :  { %2745 = vmatmul.mubr.bf16.vlgmr.msra.gmra.mrb[8].mxu1 %v1808_v11  ;;  %v1978_v11 = vrot.slane %v1969_v51, %v328_v10  ;;  %v4407_v10 = vld [vmem:[#allocation6 + $0x98] sm:$0xff]  }
 0x217   :  { %3889 = vmatprep.mubr.msk.bf16.mxu1 %vm4502_vm0, %v4501_v12  ;;  %3874 = vmatpush3.bf16.msra.mxu1 %v4412_v31 }
 0x218   :  { %3875 = vmatprep.subr.bf16.mxu1 %v4501_v12 }
 0x21b   :  { %3876 = vmatpush3.bf16.msra.mxu1 %v4413_v32 }
 0x21c   :  { %3877 = vmatprep.subr.bf16.mxu1 %v4501_v12 }
 0x21f   :  { %3878 = vmatpush3.bf16.msra.mxu1 %v4414_v9 }
 0x220   :  { %3879 = vmatprep.subr.bf16.mxu1 %v4501_v12 }
 0x223   :  { %3880 = vmatpush3.bf16.msra.mxu1 %v4415_v33 }
 0x224   :  { %3881 = vmatprep.subr.bf16.mxu1 %v4501_v12 }
 0x227   :  { %3882 = vmatpush3.bf16.msra.mxu1 %v4416_v34 }
 0x228   :  { %3883 = vmatprep.subr.bf16.mxu1 %v4501_v12 }
 0x22b   :  { %3884 = vmatpush3.bf16.msra.mxu1 %v4417_v35 }
 0x22c   :  { %3885 = vmatprep.subr.bf16.mxu1 %v4501_v12 }
 0x22f   :  { %3886 = vmatpush3.bf16.msra.mxu1 %v4418_v36 }
 0x230   :  { %3887 = vmatprep.subr.bf16.mxu1 %v4501_v12 }
 0x233   :  { %3888 = vmatpush3.bf16.msra.mxu1 %v4419_v37 }
 0x289   :  { %v3736_v43 = vpop.f32.mrb[12].mxu0 }
 0x28a   :  { %v3737_v45 = vpop.f32.mrb[13].mxu0 }
 0x28b   :  { %v3738_v46 = vadd.f32 %v3737_v45, %v3736_v43  ;;  %v3739_v48 = vpop.f32.mrb[14].mxu0 }
 0x28c   :  { %v3740_v49 = vpop.f32.mrb[15].mxu0 }
 0x28d   :  { %v3741_v50 = vadd.f32 %v3740_v49, %v3739_v48  ;;  %v2790_v54 = vadd.f32 %v3738_v46, %v1982_v52  ;;  %v3624_v46 = vld [vmem:[%s4745_s6] ss:$0 sm:$0xff] }
 0x28f   :  { %v2793_v58 = vadd.f32 %v3741_v50, %v1982_v52 }
 0x2a9   :  { %v3758_v53 = vpop.f32.mrb[16].mxu0 }
 0x2aa   :  { %v3759_v41 = vpop.f32.mrb[17].mxu0 }
 0x2ab   :  { %v3760_v55 = vadd.f32 %v3759_v41, %v3758_v53  ;;  %v3761_v56 = vpop.f32.mrb[18].mxu0 }
 0x2ac   :  { %v3762_v57 = vpop.f32.mrb[19].mxu0 }
 0x2ad   :  { %v3763_v59 = vadd.f32 %v3762_v57, %v3761_v56  ;;  %v2831_v47 = vadd.f32 %v3760_v55, %v2790_v54  ;;  %v3649_v57 = vld [vmem:[%s4747_s8] ss:$0 sm:$0xff] }
 0x2af   :  { %v2834_v30 = vadd.f32 %v3763_v59, %v2793_v58 }
 0x2c9   :  { %v2871_v60 = vpop.f32.mrb[20].mxu0 }
 0x2ca   :  { %v2872_v61 = vadd.f32 %v2871_v60, %v2831_v47  ;;  %v3851_v62 = vpop.f32.mrb[21].mxu0 }
 0x2cb   :  { %v2874_v63 = vpop.f32.mrb[22].mxu0 }
 0x2cc   :  { %v2875_v0 = vadd.f32 %v2874_v63, %v2834_v30  ;;  %v3852_v1 = vpop.f32.mrb[23].mxu0  ;;  %v2880_v2 = vmax.f32 %v2872_v61, 0.0 }
 0x2ce   :  { %v2883_v3 = vmax.f32 %v2875_v0, 0.0 }
 0x2d0   :  { %v2886_v4 = vpack.c.bf16 %v2883_v3, %v2880_v2 }
 0x2e9   :  { %v2746_v13 = vpop.f32.mrb[8].mxu1 }
 0x2ea   :  { %v3901_v14 = vadd.f32 %v2746_v13, %v1974_v8  ;;  %v2748_v15 = vpop.f32.mrb[9].mxu1 }
 0x2eb   :  { %v3902_v17 = vadd.f32 %v2748_v15, %v1978_v11  ;;  %v2750_v18 = vpop.f32.mrb[10].mxu1 }
 0x2ec   :  { %v3903_v19 = vadd.f32 %v2750_v18, %v1974_v8  ;;  %v2752_v20 = vpop.f32.mrb[11].mxu1  ;;  %v2878_v5 = vmax.f32 %v3901_v14, 0.0 }
 0x2ed   :  { %v3904_v21 = vadd.f32 %v2752_v20, %v1978_v11  ;;  %v2879_v44 = vmax.f32 %v3902_v17, 0.0 }
 0x2ee   :  { %v2881_v22 = vmax.f32 %v3903_v19, 0.0 }
 0x2ef   :  { %v2882_v23 = vmax.f32 %v3904_v21, 0.0 }
 0x2f0   :  { %v2884_v16 = vpack.c.bf16 %v2881_v22, %v2878_v5 }
 0x2f1   :  { %v2885_v24 = vpack.c.bf16 %v2882_v23, %v2879_v44 }
 0x2f3   :  { %3118 = vmatprep.mubr.bf16.mxu0 %v2885_v24 }
 0x2f4   :  { %3119 = vmatmul.mubr.bf16.vlgmr.msra.gmra.mrb[24].mxu0 %v2884_v16 }
 0x2f5   :  { %3854 = vmatpush3.bf16.msra.mxu0 %v4404_v25  ;;  %3869 = vmatprep.mubr.msk.bf16.mxu0 %vm4502_vm0, %v4501_v12 }
 0x2f6   :  { %3855 = vmatprep.subr.bf16.mxu0 %v4501_v12 }
 0x2f9   :  { %3856 = vmatpush3.bf16.msra.mxu0 %v4405_v6 }
 0x2fa   :  { %3857 = vmatprep.subr.bf16.mxu0 %v4501_v12 }
 0x2fd   :  { %3858 = vmatpush3.bf16.msra.mxu0 %v4406_v7 }
 0x2fe   :  { %3859 = vmatprep.subr.bf16.mxu0 %v4501_v12 }
 0x301   :  { %3860 = vmatpush3.bf16.msra.mxu0 %v4407_v10 }
 0x302   :  { %3861 = vmatprep.subr.bf16.mxu0 %v4501_v12 }
 0x305   :  { %3862 = vmatpush3.bf16.msra.mxu0 %v4408_v26 }
 0x306   :  { %3863 = vmatprep.subr.bf16.mxu0 %v4501_v12 }
 0x309   :  { %3864 = vmatpush3.bf16.msra.mxu0 %v4409_v27 }
 0x30a   :  { %3865 = vmatprep.subr.bf16.mxu0 %v4501_v12 }
 0x30d   :  { %3866 = vmatpush3.bf16.msra.mxu0 %v4410_v28 }
 0x30e   :  { %3867 = vmatprep.subr.bf16.mxu0 %v4501_v12 }
 0x311   :  { %3868 = vmatpush3.bf16.msra.mxu0 %v4411_v29 }
 0x314   :  { %3870 = vmatmul.mubr.bf16.vlgmr.msra.gmra.mrb[28].mxu0 %v2886_v4 }
 0x3c7   :  { %v3789_v38 = vpop.f32.mrb[24].mxu0 }
 0x3c8   :  { %v3790_v39 = vpop.f32.mrb[25].mxu0 }
 0x3c9   :  { %v3791_v40 = vadd.f32 %v3790_v39, %v3789_v38  ;;  %v3792_v42 = vpop.f32.mrb[26].mxu0 }
 0x3ca   :  { %v3793_v43 = vpop.f32.mrb[27].mxu0 }
 0x3cb   :  { %v3794_v45 = vadd.f32 %v3793_v43, %v3792_v42  ;;  %v3121_v48 = vadd.f32 %v3791_v40, %v3624_v46 }
 0x3cd   :  { %v3124_v12 = vadd.f32 %v3794_v45, %v3624_v46 }
 0x3e7   :  { %v3161_v49 = vpop.f32.mrb[28].mxu0 }
 0x3e8   :  { %v3162_v50 = vadd.f32 %v3161_v49, %v3121_v48  ;;  %v3871_v51 = vpop.f32.mrb[29].mxu0 }
 0x3e9   :  { %v3164_v52 = vpop.f32.mrb[30].mxu0 }
 0x3ea   :  { %v3165_v53 = vadd.f32 %v3164_v52, %v3124_v12  ;;  %v3872_v41 = vpop.f32.mrb[31].mxu0  ;;  %v3168_v54 = vmax.f32 %v3162_v50, 0.0 }
 0x3ec   :  { %v3169_v55 = vmax.f32 %v3165_v53, 0.0 }
 0x3ee   :  { %v3170_v56 = vpack.c.bf16 %v3169_v55, %v3168_v54 }
 0x3f0   :  { %3890 = vmatmul.mubr.bf16.vlgmr.msra.gmra.mrb[12].mxu1 %v3170_v56 }
 0x4c3   :  { %v3276_v58 = vpop.f32.mrb[12].mxu1 }
 0x4c4   :  { %v3891_v59 = vpop.f32.mrb[13].mxu1  ;;  %v3277_v30 = vadd.f32 %v3649_v57, %v3276_v58 }
 0x4c5   :  { %v3279_v47 = vpop.f32.mrb[14].mxu1 }
 0x4c6   :  { %v3280_v60 = vadd.f32 %v3649_v57, %v3279_v47  ;;  %v3892_v61 = vpop.f32.mrb[15].mxu1 }
 0x4c8   :  { %v3665_v62 = vpack.c.bf16 %v3280_v60, %v3277_v30 }
 0x4ca   :  { %3666 = vst [vmem:[%s4748_s9] sm:$0xff] %v3665_v62  }
 0x4cb   :  { %3297 = vsyncpa [#allocation3], 1 }
 0x4cc   :  { %3298 = vsyncpa [#allocation5], 1 }

</bundles_post_ra>
